<compile_context>
chip_gen: v6e
topology: v6e:2x2x1
jax: 0.10.0
libtpu: 0.0.40
codegen_flags: <defaults>
</compile_context>

<pallas_src>
import math

import jax
import jax.numpy as jnp
from jax.experimental import pallas as pl
from jax.experimental.pallas import tpu as pltpu

# ---------------- config (small, consistent with the module) ----------------
B = 2            # batch
S = 8            # seq_len
H = 32           # hidden_size
NUM_HEADS = 4    # num_attention_heads
HEAD_DIM = H // NUM_HEADS
INTER = 64       # intermediate_size
EPS = 1e-6       # rms_norm_eps
MAX_POS = 32     # max_position_embeddings
NEG_INF = float(jnp.finfo(jnp.float32).min)


# ------------------- fused decoder-layer kernel (one batch per grid step) -------------------
def decoder_layer_kernel(x_ref, cos_ref, sin_ref, mask_ref,
                         ln1_ref, ln2_ref, wqkv_ref, wo_ref, wgu_ref, wd_ref,
                         o_ref):
    x = x_ref[...].astype(jnp.float32)          # (S, H)
    cos = cos_ref[...].astype(jnp.float32)      # (S, D)
    sin = sin_ref[...].astype(jnp.float32)      # (S, D)
    mask = mask_ref[...].astype(jnp.float32)    # (S, S)

    # ---- input RMSNorm ----
    var = jnp.mean(x * x, axis=-1, keepdims=True)
    hn = (x * jax.lax.rsqrt(var + EPS)) * ln1_ref[...].astype(jnp.float32)

    # ---- fused Q|K|V projection: one MXU push, lane-dense (S, 3H) output ----
    qkv = jnp.dot(hn, wqkv_ref[...].astype(jnp.float32),
                  preferred_element_type=jnp.float32)               # (S, 3H)

    scale = 1.0 / math.sqrt(HEAD_DIM)
    half = HEAD_DIM // 2

    def rope(t):  # t: (S, D);  rotate_half(t) = concat(-t2, t1)
        rot = jnp.concatenate([-t[:, half:], t[:, :half]], axis=-1)
        return t * cos + rot * sin

    # ---- attention: all heads unrolled in-kernel (no per-head grid steps) ----
    head_outs = []
    for h in range(NUM_HEADS):
        q_h = rope(qkv[:, h * HEAD_DIM:(h + 1) * HEAD_DIM])          # (S, D)
        k_h = rope(qkv[:, H + h * HEAD_DIM:H + (h + 1) * HEAD_DIM])  # (S, D)
        v_h = qkv[:, 2 * H + h * HEAD_DIM:2 * H + (h + 1) * HEAD_DIM]

        scores = jax.lax.dot_general(q_h, k_h, (((1,), (1,)), ((), ())),
                                     preferred_element_type=jnp.float32) * scale
        scores = jnp.maximum(scores + mask, NEG_INF)                 # HF dtype-min clamp
        m = jnp.max(scores, axis=-1, keepdims=True)
        p = jnp.exp(scores - m)
        p = p / jnp.sum(p, axis=-1, keepdims=True)
        head_outs.append(jnp.dot(p, v_h, preferred_element_type=jnp.float32))
    attn = jnp.concatenate(head_outs, axis=-1)                       # (S, H)

    # ---- o_proj + residual ----
    h1 = x + jnp.dot(attn, wo_ref[...].astype(jnp.float32),
                     preferred_element_type=jnp.float32)

    # ---- post-attention RMSNorm ----
    var2 = jnp.mean(h1 * h1, axis=-1, keepdims=True)
    hn2 = (h1 * jax.lax.rsqrt(var2 + EPS)) * ln2_ref[...].astype(jnp.float32)

    # ---- MLP: fused gate|up (S, 2*INTER) -> SiLU(g)*u -> down + residual ----
    gu = jnp.dot(hn2, wgu_ref[...].astype(jnp.float32),
                 preferred_element_type=jnp.float32)                 # (S, 2*INTER)
    g = gu[:, :INTER]
    u = gu[:, INTER:]
    act = (g * jax.nn.sigmoid(g)) * u
    out = h1 + jnp.dot(act, wd_ref[...].astype(jnp.float32),
                       preferred_element_type=jnp.float32)

    o_ref[...] = out.astype(o_ref.dtype)


def llama_decoder_layer(params, hidden_states, attention_mask, position_ids):
    Bq, Sq, Hd = hidden_states.shape

    # Host/XLA glue: one-time weight concatenation + rotary-table gather
    wqkv = jnp.concatenate([params["wq"], params["wk"], params["wv"]], axis=1)  # (H, 3H)
    wgu = jnp.concatenate([params["wg"], params["wu"]], axis=1)                 # (H, 2I)
    cos_b = params["cos_cached"][position_ids]   # (B, S, D)  (== torch.gather)
    sin_b = params["sin_cached"][position_ids]   # (B, S, D)

    return pl.pallas_call(
        decoder_layer_kernel,
        out_shape=jax.ShapeDtypeStruct((Bq, Sq, Hd), hidden_states.dtype),
        grid=(Bq,),
        in_specs=[
            pl.BlockSpec((None, Sq, Hd), lambda b: (b, 0, 0)),          # x (per batch)
            pl.BlockSpec((None, Sq, HEAD_DIM), lambda b: (b, 0, 0)),    # cos
            pl.BlockSpec((None, Sq, HEAD_DIM), lambda b: (b, 0, 0)),    # sin
            pl.BlockSpec((None, None, Sq, Sq), lambda b: (b, 0, 0, 0)), # mask
            pl.BlockSpec((1, Hd), lambda b: (0, 0)),                    # input_ln
            pl.BlockSpec((1, Hd), lambda b: (0, 0)),                    # post_ln
            pl.BlockSpec((Hd, 3 * Hd), lambda b: (0, 0)),               # wqkv
            pl.BlockSpec((Hd, Hd), lambda b: (0, 0)),                   # wo
            pl.BlockSpec((Hd, 2 * INTER), lambda b: (0, 0)),            # w gate|up
            pl.BlockSpec((INTER, Hd), lambda b: (0, 0)),                # w down
        ],
        out_specs=pl.BlockSpec((None, Sq, Hd), lambda b: (b, 0, 0)),
        compiler_params=pltpu.CompilerParams(
            dimension_semantics=("parallel",)),   # batches shard across TCs on v7x
    )(hidden_states, cos_b, sin_b, attention_mask,
      params["input_ln"].reshape(1, Hd), params["post_ln"].reshape(1, Hd),
      wqkv, params["wo"], wgu, params["wd"])
    # TODO(synk): use_cache / output_attentions / past_key_value paths not modeled
    # (forward called with defaults: past_key_value=None, use_cache=False).


# ------------------------- pure-JAX reference -------------------------
def ref_layer(params, x, mask, pos_ids):
    def rms(h, w):
        var = jnp.mean(h.astype(jnp.float32) ** 2, axis=-1, keepdims=True)
        return w * (h * jax.lax.rsqrt(var + EPS))

    residual = x
    h = rms(x, params["input_ln"])
    q = h @ params["wq"]
    k = h @ params["wk"]
    v = h @ params["wv"]

    def sh(t):
        return t.reshape(B, S, NUM_HEADS, HEAD_DIM).transpose(0, 2, 1, 3)

    q, k, v = sh(q), sh(k), sh(v)
    cos = params["cos_cached"][pos_ids][:, None]  # (B,1,S,D)
    sin = params["sin_cached"][pos_ids][:, None]

    def rot_half(t):
        return jnp.concatenate([-t[..., HEAD_DIM // 2:], t[..., :HEAD_DIM // 2]], axis=-1)

    q = q * cos + rot_half(q) * sin
    k = k * cos + rot_half(k) * sin

    scores = jnp.einsum("bhqd,bhkd->bhqk", q, k) / math.sqrt(HEAD_DIM)
    scores = scores + mask
    scores = jnp.maximum(scores, NEG_INF)
    p = jax.nn.softmax(scores, axis=-1)
    attn = jnp.einsum("bhqk,bhkd->bhqd", p, v)
    attn = attn.transpose(0, 2, 1, 3).reshape(B, S, H)

    h = residual + attn @ params["wo"]
    residual = h
    hn = rms(h, params["post_ln"])
    g = hn @ params["wg"]
    u = hn @ params["wu"]
    return residual + (g * jax.nn.sigmoid(g) * u) @ params["wd"]


# ------------------------------ params / main ------------------------------
def init_params(key):
    ks = jax.random.split(key, 8)
    scale = 0.02
    p = {
        "input_ln": jnp.ones((H,), jnp.float32),
        "post_ln": jnp.ones((H,), jnp.float32),
        "wq": scale * jax.random.normal(ks[0], (H, H), jnp.float32),
        "wk": scale * jax.random.normal(ks[1], (H, H), jnp.float32),
        "wv": scale * jax.random.normal(ks[2], (H, H), jnp.float32),
        "wo": scale * jax.random.normal(ks[3], (H, H), jnp.float32),
        "wg": scale * jax.random.normal(ks[4], (H, INTER), jnp.float32),
        "wu": scale * jax.random.normal(ks[5], (H, INTER), jnp.float32),
        "wd": scale * jax.random.normal(ks[6], (INTER, H), jnp.float32),
    }
    # LlamaRotaryEmbedding cached tables
    inv_freq = 1.0 / (10000.0 ** (jnp.arange(0, HEAD_DIM, 2, dtype=jnp.float32) / HEAD_DIM))
    t = jnp.arange(MAX_POS, dtype=jnp.float32)
    freqs = jnp.einsum("i,j->ij", t, inv_freq)
    emb = jnp.concatenate([freqs, freqs], axis=-1)   # (MAX_POS, HEAD_DIM)
    p["cos_cached"] = jnp.cos(emb)
    p["sin_cached"] = jnp.sin(emb)
    return p


if __name__ == "__main__":
    key = jax.random.PRNGKey(0)
    kx, kp = jax.random.split(key)
    params = init_params(kp)

    hidden_states = jax.random.normal(kx, (B, S, H), jnp.float32)
    position_ids = jnp.broadcast_to(jnp.arange(S, dtype=jnp.int32), (B, S))
    causal = jnp.arange(S)[None, :] > jnp.arange(S)[:, None]
    attention_mask = jnp.where(causal, NEG_INF, 0.0).astype(jnp.float32)
    attention_mask = jnp.broadcast_to(attention_mask, (B, 1, S, S))

    out = llama_decoder_layer(params, hidden_states, attention_mask, position_ids)
    out = jax.block_until_ready(out)

    ref = ref_layer(params, hidden_states, attention_mask, position_ids)
    assert out.shape == (B, S, H)
    assert jnp.allclose(out, ref, atol=2e-3, rtol=2e-3), "mismatch vs pure-JAX reference"

    print("KERNEL_OK")
</pallas_src>

<mosaic_0001>
module attributes {stable_mosaic.version = 11 : i64} {
  func.func @decoder_layer_kernel(%arg0: i32, %arg1: memref<1x8x32xf32, #tpu.memory_space<vmem>>, %arg2: memref<1x8x8xf32, #tpu.memory_space<vmem>>, %arg3: memref<1x8x8xf32, #tpu.memory_space<vmem>>, %arg4: memref<1x1x8x8xf32, #tpu.memory_space<vmem>>, %arg5: memref<1x32xf32, #tpu.memory_space<vmem>>, %arg6: memref<1x32xf32, #tpu.memory_space<vmem>>, %arg7: memref<32x96xf32, #tpu.memory_space<vmem>>, %arg8: memref<32x32xf32, #tpu.memory_space<vmem>>, %arg9: memref<32x128xf32, #tpu.memory_space<vmem>>, %arg10: memref<64x32xf32, #tpu.memory_space<vmem>>, %arg11: memref<1x8x32xf32, #tpu.memory_space<vmem>>) attributes {dimension_semantics = [#tpu.dimension_semantics<parallel>], iteration_bounds = array<i64: 2>, scalar_prefetch = 0 : i64, scratch_operands = 0 : i64, tpu.core_type = #tpu.core_type<tc>, window_params = [{transform_indices = @transform_0, window_bounds = array<i64: 1, 8, 32>}, {transform_indices = @transform_1, window_bounds = array<i64: 1, 8, 8>}, {transform_indices = @transform_2, window_bounds = array<i64: 1, 8, 8>}, {transform_indices = @transform_3, window_bounds = array<i64: 1, 1, 8, 8>}, {pipeline_mode = #tpu.pipeline_mode<synchronous>, transform_indices = @transform_4, window_bounds = array<i64: 1, 32>}, {pipeline_mode = #tpu.pipeline_mode<synchronous>, transform_indices = @transform_5, window_bounds = array<i64: 1, 32>}, {pipeline_mode = #tpu.pipeline_mode<synchronous>, transform_indices = @transform_6, window_bounds = array<i64: 32, 96>}, {pipeline_mode = #tpu.pipeline_mode<synchronous>, transform_indices = @transform_7, window_bounds = array<i64: 32, 32>}, {pipeline_mode = #tpu.pipeline_mode<synchronous>, transform_indices = @transform_8, window_bounds = array<i64: 32, 128>}, {pipeline_mode = #tpu.pipeline_mode<synchronous>, transform_indices = @transform_9, window_bounds = array<i64: 64, 32>}, {transform_indices = @transform_10, window_bounds = array<i64: 1, 8, 32>}]} {
    %c0 = arith.constant 0 : index
    %c0_0 = arith.constant 0 : index
    %c0_1 = arith.constant 0 : index
    %0 = vector.load %arg1[%c0, %c0_0, %c0_1] : memref<1x8x32xf32, #tpu.memory_space<vmem>>, vector<1x8x32xf32>
    %1 = vector.shape_cast %0 : vector<1x8x32xf32> to vector<8x32xf32>
    %c0_2 = arith.constant 0 : index
    %c0_3 = arith.constant 0 : index
    %c0_4 = arith.constant 0 : index
    %2 = vector.load %arg2[%c0_2, %c0_3, %c0_4] : memref<1x8x8xf32, #tpu.memory_space<vmem>>, vector<1x8x8xf32>
    %3 = vector.shape_cast %2 : vector<1x8x8xf32> to vector<8x8xf32>
    %c0_5 = arith.constant 0 : index
    %c0_6 = arith.constant 0 : index
    %c0_7 = arith.constant 0 : index
    %4 = vector.load %arg3[%c0_5, %c0_6, %c0_7] : memref<1x8x8xf32, #tpu.memory_space<vmem>>, vector<1x8x8xf32>
    %5 = vector.shape_cast %4 : vector<1x8x8xf32> to vector<8x8xf32>
    %c0_8 = arith.constant 0 : index
    %c0_9 = arith.constant 0 : index
    %c0_10 = arith.constant 0 : index
    %c0_11 = arith.constant 0 : index
    %6 = vector.load %arg4[%c0_8, %c0_9, %c0_10, %c0_11] : memref<1x1x8x8xf32, #tpu.memory_space<vmem>>, vector<1x1x8x8xf32>
    %7 = vector.shape_cast %6 : vector<1x1x8x8xf32> to vector<8x8xf32>
    %8 = arith.mulf %1, %1 : vector<8x32xf32>
    %cst = arith.constant dense<0.000000e+00> : vector<8xf32>
    %9 = vector.multi_reduction <add>, %8, %cst [1] : vector<8x32xf32> to vector<8xf32>
    %10 = vector.shape_cast %9 : vector<8xf32> to vector<8x1xf32>
    %cst_12 = arith.constant 3.200000e+01 : f32
    %11 = vector.broadcast %cst_12 : f32 to vector<8x1xf32>
    %12 = arith.divf %10, %11 : vector<8x1xf32>
    %cst_13 = arith.constant 9.99999997E-7 : f32
    %13 = vector.broadcast %cst_13 : f32 to vector<8x1xf32>
    %14 = arith.addf %12, %13 : vector<8x1xf32>
    %15 = math.rsqrt %14 : vector<8x1xf32>
    %16 = vector.broadcast %15 : vector<8x1xf32> to vector<8x32xf32>
    %17 = arith.mulf %1, %16 : vector<8x32xf32>
    %c0_14 = arith.constant 0 : index
    %c0_15 = arith.constant 0 : index
    %18 = vector.load %arg5[%c0_14, %c0_15] : memref<1x32xf32, #tpu.memory_space<vmem>>, vector<1x32xf32>
    %19 = vector.broadcast %18 : vector<1x32xf32> to vector<8x32xf32>
    %20 = arith.mulf %17, %19 : vector<8x32xf32>
    %c0_16 = arith.constant 0 : index
    %c0_17 = arith.constant 0 : index
    %21 = vector.load %arg7[%c0_16, %c0_17] : memref<32x96xf32, #tpu.memory_space<vmem>>, vector<32x96xf32>
    %cst_18 = arith.constant dense<0.000000e+00> : vector<8x96xf32>
    %22 = tpu.matmul %20, %21, %cst_18 {dimension_numbers = #tpu.dot_dimension_numbers<[1], [0], [0], [1], [0, 0, 1, 1], [], []>} : vector<8x32xf32>, vector<32x96xf32>, vector<8x96xf32> -> vector<8x96xf32>
    %23 = vector.extract_strided_slice %22 {offsets = [0, 0], sizes = [8, 8], strides = [1, 1]} : vector<8x96xf32> to vector<8x8xf32>
    %24 = vector.extract_strided_slice %23 {offsets = [0, 4], sizes = [8, 4], strides = [1, 1]} : vector<8x8xf32> to vector<8x4xf32>
    %cst_19 = arith.constant 0.000000e+00 : f32
    %25 = vector.broadcast %cst_19 : f32 to vector<8x4xf32>
    %26 = arith.subf %25, %24 : vector<8x4xf32>
    %27 = vector.extract_strided_slice %23 {offsets = [0, 0], sizes = [8, 4], strides = [1, 1]} : vector<8x8xf32> to vector<8x4xf32>
    %28 = tpu.concatenate %26, %27 in 1 : vector<8x4xf32>, vector<8x4xf32> -> vector<8x8xf32>
    %29 = arith.mulf %23, %3 : vector<8x8xf32>
    %30 = arith.mulf %28, %5 : vector<8x8xf32>
    %31 = arith.addf %29, %30 : vector<8x8xf32>
    %32 = vector.extract_strided_slice %22 {offsets = [0, 32], sizes = [8, 8], strides = [1, 1]} : vector<8x96xf32> to vector<8x8xf32>
    %33 = vector.extract_strided_slice %32 {offsets = [0, 4], sizes = [8, 4], strides = [1, 1]} : vector<8x8xf32> to vector<8x4xf32>
    %cst_20 = arith.constant 0.000000e+00 : f32
    %34 = vector.broadcast %cst_20 : f32 to vector<8x4xf32>
    %35 = arith.subf %34, %33 : vector<8x4xf32>
    %36 = vector.extract_strided_slice %32 {offsets = [0, 0], sizes = [8, 4], strides = [1, 1]} : vector<8x8xf32> to vector<8x4xf32>
    %37 = tpu.concatenate %35, %36 in 1 : vector<8x4xf32>, vector<8x4xf32> -> vector<8x8xf32>
    %38 = arith.mulf %32, %3 : vector<8x8xf32>
    %39 = arith.mulf %37, %5 : vector<8x8xf32>
    %40 = arith.addf %38, %39 : vector<8x8xf32>
    %41 = vector.extract_strided_slice %22 {offsets = [0, 64], sizes = [8, 8], strides = [1, 1]} : vector<8x96xf32> to vector<8x8xf32>
    %cst_21 = arith.constant dense<0.000000e+00> : vector<8x8xf32>
    %42 = tpu.matmul %31, %40, %cst_21 {dimension_numbers = #tpu.dot_dimension_numbers<[1], [1], [0], [0], [0, 0, 1, 0], [], []>} : vector<8x8xf32>, vector<8x8xf32>, vector<8x8xf32> -> vector<8x8xf32>
    %cst_22 = arith.constant 0.353553385 : f32
    %43 = vector.broadcast %cst_22 : f32 to vector<8x8xf32>
    %44 = arith.mulf %42, %43 : vector<8x8xf32>
    %45 = arith.addf %44, %7 : vector<8x8xf32>
    %cst_23 = arith.constant -3.40282347E+38 : f32
    %46 = vector.broadcast %cst_23 : f32 to vector<8x8xf32>
    %47 = arith.maximumf %45, %46 : vector<8x8xf32>
    %cst_24 = arith.constant dense<0xFF800000> : vector<8xf32>
    %48 = vector.multi_reduction <maximumf>, %47, %cst_24 [1] : vector<8x8xf32> to vector<8xf32>
    %49 = vector.shape_cast %48 : vector<8xf32> to vector<8x1xf32>
    %50 = vector.broadcast %49 : vector<8x1xf32> to vector<8x8xf32>
    %51 = arith.subf %47, %50 : vector<8x8xf32>
    %52 = math.exp %51 : vector<8x8xf32>
    %cst_25 = arith.constant dense<0.000000e+00> : vector<8xf32>
    %53 = vector.multi_reduction <add>, %52, %cst_25 [1] : vector<8x8xf32> to vector<8xf32>
    %54 = vector.shape_cast %53 : vector<8xf32> to vector<8x1xf32>
    %55 = vector.broadcast %54 : vector<8x1xf32> to vector<8x8xf32>
    %56 = arith.divf %52, %55 : vector<8x8xf32>
    %cst_26 = arith.constant dense<0.000000e+00> : vector<8x8xf32>
    %57 = tpu.matmul %56, %41, %cst_26 {dimension_numbers = #tpu.dot_dimension_numbers<[1], [0], [0], [1], [0, 0, 1, 1], [], []>} : vector<8x8xf32>, vector<8x8xf32>, vector<8x8xf32> -> vector<8x8xf32>
    %58 = vector.extract_strided_slice %22 {offsets = [0, 8], sizes = [8, 8], strides = [1, 1]} : vector<8x96xf32> to vector<8x8xf32>
    %59 = vector.extract_strided_slice %58 {offsets = [0, 4], sizes = [8, 4], strides = [1, 1]} : vector<8x8xf32> to vector<8x4xf32>
    %cst_27 = arith.constant 0.000000e+00 : f32
    %60 = vector.broadcast %cst_27 : f32 to vector<8x4xf32>
    %61 = arith.subf %60, %59 : vector<8x4xf32>
    %62 = vector.extract_strided_slice %58 {offsets = [0, 0], sizes = [8, 4], strides = [1, 1]} : vector<8x8xf32> to vector<8x4xf32>
    %63 = tpu.concatenate %61, %62 in 1 : vector<8x4xf32>, vector<8x4xf32> -> vector<8x8xf32>
    %64 = arith.mulf %58, %3 : vector<8x8xf32>
    %65 = arith.mulf %63, %5 : vector<8x8xf32>
    %66 = arith.addf %64, %65 : vector<8x8xf32>
    %67 = vector.extract_strided_slice %22 {offsets = [0, 40], sizes = [8, 8], strides = [1, 1]} : vector<8x96xf32> to vector<8x8xf32>
    %68 = vector.extract_strided_slice %67 {offsets = [0, 4], sizes = [8, 4], strides = [1, 1]} : vector<8x8xf32> to vector<8x4xf32>
    %cst_28 = arith.constant 0.000000e+00 : f32
    %69 = vector.broadcast %cst_28 : f32 to vector<8x4xf32>
    %70 = arith.subf %69, %68 : vector<8x4xf32>
    %71 = vector.extract_strided_slice %67 {offsets = [0, 0], sizes = [8, 4], strides = [1, 1]} : vector<8x8xf32> to vector<8x4xf32>
    %72 = tpu.concatenate %70, %71 in 1 : vector<8x4xf32>, vector<8x4xf32> -> vector<8x8xf32>
    %73 = arith.mulf %67, %3 : vector<8x8xf32>
    %74 = arith.mulf %72, %5 : vector<8x8xf32>
    %75 = arith.addf %73, %74 : vector<8x8xf32>
    %76 = vector.extract_strided_slice %22 {offsets = [0, 72], sizes = [8, 8], strides = [1, 1]} : vector<8x96xf32> to vector<8x8xf32>
    %cst_29 = arith.constant dense<0.000000e+00> : vector<8x8xf32>
    %77 = tpu.matmul %66, %75, %cst_29 {dimension_numbers = #tpu.dot_dimension_numbers<[1], [1], [0], [0], [0, 0, 1, 0], [], []>} : vector<8x8xf32>, vector<8x8xf32>, vector<8x8xf32> -> vector<8x8xf32>
    %cst_30 = arith.constant 0.353553385 : f32
    %78 = vector.broadcast %cst_30 : f32 to vector<8x8xf32>
    %79 = arith.mulf %77, %78 : vector<8x8xf32>
    %80 = arith.addf %79, %7 : vector<8x8xf32>
    %cst_31 = arith.constant -3.40282347E+38 : f32
    %81 = vector.broadcast %cst_31 : f32 to vector<8x8xf32>
    %82 = arith.maximumf %80, %81 : vector<8x8xf32>
    %cst_32 = arith.constant dense<0xFF800000> : vector<8xf32>
    %83 = vector.multi_reduction <maximumf>, %82, %cst_32 [1] : vector<8x8xf32> to vector<8xf32>
    %84 = vector.shape_cast %83 : vector<8xf32> to vector<8x1xf32>
    %85 = vector.broadcast %84 : vector<8x1xf32> to vector<8x8xf32>
    %86 = arith.subf %82, %85 : vector<8x8xf32>
    %87 = math.exp %86 : vector<8x8xf32>
    %cst_33 = arith.constant dense<0.000000e+00> : vector<8xf32>
    %88 = vector.multi_reduction <add>, %87, %cst_33 [1] : vector<8x8xf32> to vector<8xf32>
    %89 = vector.shape_cast %88 : vector<8xf32> to vector<8x1xf32>
    %90 = vector.broadcast %89 : vector<8x1xf32> to vector<8x8xf32>
    %91 = arith.divf %87, %90 : vector<8x8xf32>
    %cst_34 = arith.constant dense<0.000000e+00> : vector<8x8xf32>
    %92 = tpu.matmul %91, %76, %cst_34 {dimension_numbers = #tpu.dot_dimension_numbers<[1], [0], [0], [1], [0, 0, 1, 1], [], []>} : vector<8x8xf32>, vector<8x8xf32>, vector<8x8xf32> -> vector<8x8xf32>
    %93 = vector.extract_strided_slice %22 {offsets = [0, 16], sizes = [8, 8], strides = [1, 1]} : vector<8x96xf32> to vector<8x8xf32>
    %94 = vector.extract_strided_slice %93 {offsets = [0, 4], sizes = [8, 4], strides = [1, 1]} : vector<8x8xf32> to vector<8x4xf32>
    %cst_35 = arith.constant 0.000000e+00 : f32
    %95 = vector.broadcast %cst_35 : f32 to vector<8x4xf32>
    %96 = arith.subf %95, %94 : vector<8x4xf32>
    %97 = vector.extract_strided_slice %93 {offsets = [0, 0], sizes = [8, 4], strides = [1, 1]} : vector<8x8xf32> to vector<8x4xf32>
    %98 = tpu.concatenate %96, %97 in 1 : vector<8x4xf32>, vector<8x4xf32> -> vector<8x8xf32>
    %99 = arith.mulf %93, %3 : vector<8x8xf32>
    %100 = arith.mulf %98, %5 : vector<8x8xf32>
    %101 = arith.addf %99, %100 : vector<8x8xf32>
    %102 = vector.extract_strided_slice %22 {offsets = [0, 48], sizes = [8, 8], strides = [1, 1]} : vector<8x96xf32> to vector<8x8xf32>
    %103 = vector.extract_strided_slice %102 {offsets = [0, 4], sizes = [8, 4], strides = [1, 1]} : vector<8x8xf32> to vector<8x4xf32>
    %cst_36 = arith.constant 0.000000e+00 : f32
    %104 = vector.broadcast %cst_36 : f32 to vector<8x4xf32>
    %105 = arith.subf %104, %103 : vector<8x4xf32>
    %106 = vector.extract_strided_slice %102 {offsets = [0, 0], sizes = [8, 4], strides = [1, 1]} : vector<8x8xf32> to vector<8x4xf32>
    %107 = tpu.concatenate %105, %106 in 1 : vector<8x4xf32>, vector<8x4xf32> -> vector<8x8xf32>
    %108 = arith.mulf %102, %3 : vector<8x8xf32>
    %109 = arith.mulf %107, %5 : vector<8x8xf32>
    %110 = arith.addf %108, %109 : vector<8x8xf32>
    %111 = vector.extract_strided_slice %22 {offsets = [0, 80], sizes = [8, 8], strides = [1, 1]} : vector<8x96xf32> to vector<8x8xf32>
    %cst_37 = arith.constant dense<0.000000e+00> : vector<8x8xf32>
    %112 = tpu.matmul %101, %110, %cst_37 {dimension_numbers = #tpu.dot_dimension_numbers<[1], [1], [0], [0], [0, 0, 1, 0], [], []>} : vector<8x8xf32>, vector<8x8xf32>, vector<8x8xf32> -> vector<8x8xf32>
    %cst_38 = arith.constant 0.353553385 : f32
    %113 = vector.broadcast %cst_38 : f32 to vector<8x8xf32>
    %114 = arith.mulf %112, %113 : vector<8x8xf32>
    %115 = arith.addf %114, %7 : vector<8x8xf32>
    %cst_39 = arith.constant -3.40282347E+38 : f32
    %116 = vector.broadcast %cst_39 : f32 to vector<8x8xf32>
    %117 = arith.maximumf %115, %116 : vector<8x8xf32>
    %cst_40 = arith.constant dense<0xFF800000> : vector<8xf32>
    %118 = vector.multi_reduction <maximumf>, %117, %cst_40 [1] : vector<8x8xf32> to vector<8xf32>
    %119 = vector.shape_cast %118 : vector<8xf32> to vector<8x1xf32>
    %120 = vector.broadcast %119 : vector<8x1xf32> to vector<8x8xf32>
    %121 = arith.subf %117, %120 : vector<8x8xf32>
    %122 = math.exp %121 : vector<8x8xf32>
    %cst_41 = arith.constant dense<0.000000e+00> : vector<8xf32>
    %123 = vector.multi_reduction <add>, %122, %cst_41 [1] : vector<8x8xf32> to vector<8xf32>
    %124 = vector.shape_cast %123 : vector<8xf32> to vector<8x1xf32>
    %125 = vector.broadcast %124 : vector<8x1xf32> to vector<8x8xf32>
    %126 = arith.divf %122, %125 : vector<8x8xf32>
    %cst_42 = arith.constant dense<0.000000e+00> : vector<8x8xf32>
    %127 = tpu.matmul %126, %111, %cst_42 {dimension_numbers = #tpu.dot_dimension_numbers<[1], [0], [0], [1], [0, 0, 1, 1], [], []>} : vector<8x8xf32>, vector<8x8xf32>, vector<8x8xf32> -> vector<8x8xf32>
    %128 = vector.extract_strided_slice %22 {offsets = [0, 24], sizes = [8, 8], strides = [1, 1]} : vector<8x96xf32> to vector<8x8xf32>
    %129 = vector.extract_strided_slice %128 {offsets = [0, 4], sizes = [8, 4], strides = [1, 1]} : vector<8x8xf32> to vector<8x4xf32>
    %cst_43 = arith.constant 0.000000e+00 : f32
    %130 = vector.broadcast %cst_43 : f32 to vector<8x4xf32>
    %131 = arith.subf %130, %129 : vector<8x4xf32>
    %132 = vector.extract_strided_slice %128 {offsets = [0, 0], sizes = [8, 4], strides = [1, 1]} : vector<8x8xf32> to vector<8x4xf32>
    %133 = tpu.concatenate %131, %132 in 1 : vector<8x4xf32>, vector<8x4xf32> -> vector<8x8xf32>
    %134 = arith.mulf %128, %3 : vector<8x8xf32>
    %135 = arith.mulf %133, %5 : vector<8x8xf32>
    %136 = arith.addf %134, %135 : vector<8x8xf32>
    %137 = vector.extract_strided_slice %22 {offsets = [0, 56], sizes = [8, 8], strides = [1, 1]} : vector<8x96xf32> to vector<8x8xf32>
    %138 = vector.extract_strided_slice %137 {offsets = [0, 4], sizes = [8, 4], strides = [1, 1]} : vector<8x8xf32> to vector<8x4xf32>
    %cst_44 = arith.constant 0.000000e+00 : f32
    %139 = vector.broadcast %cst_44 : f32 to vector<8x4xf32>
    %140 = arith.subf %139, %138 : vector<8x4xf32>
    %141 = vector.extract_strided_slice %137 {offsets = [0, 0], sizes = [8, 4], strides = [1, 1]} : vector<8x8xf32> to vector<8x4xf32>
    %142 = tpu.concatenate %140, %141 in 1 : vector<8x4xf32>, vector<8x4xf32> -> vector<8x8xf32>
    %143 = arith.mulf %137, %3 : vector<8x8xf32>
    %144 = arith.mulf %142, %5 : vector<8x8xf32>
    %145 = arith.addf %143, %144 : vector<8x8xf32>
    %146 = vector.extract_strided_slice %22 {offsets = [0, 88], sizes = [8, 8], strides = [1, 1]} : vector<8x96xf32> to vector<8x8xf32>
    %cst_45 = arith.constant dense<0.000000e+00> : vector<8x8xf32>
    %147 = tpu.matmul %136, %145, %cst_45 {dimension_numbers = #tpu.dot_dimension_numbers<[1], [1], [0], [0], [0, 0, 1, 0], [], []>} : vector<8x8xf32>, vector<8x8xf32>, vector<8x8xf32> -> vector<8x8xf32>
    %cst_46 = arith.constant 0.353553385 : f32
    %148 = vector.broadcast %cst_46 : f32 to vector<8x8xf32>
    %149 = arith.mulf %147, %148 : vector<8x8xf32>
    %150 = arith.addf %149, %7 : vector<8x8xf32>
    %cst_47 = arith.constant -3.40282347E+38 : f32
    %151 = vector.broadcast %cst_47 : f32 to vector<8x8xf32>
    %152 = arith.maximumf %150, %151 : vector<8x8xf32>
    %cst_48 = arith.constant dense<0xFF800000> : vector<8xf32>
    %153 = vector.multi_reduction <maximumf>, %152, %cst_48 [1] : vector<8x8xf32> to vector<8xf32>
    %154 = vector.shape_cast %153 : vector<8xf32> to vector<8x1xf32>
    %155 = vector.broadcast %154 : vector<8x1xf32> to vector<8x8xf32>
    %156 = arith.subf %152, %155 : vector<8x8xf32>
    %157 = math.exp %156 : vector<8x8xf32>
    %cst_49 = arith.constant dense<0.000000e+00> : vector<8xf32>
    %158 = vector.multi_reduction <add>, %157, %cst_49 [1] : vector<8x8xf32> to vector<8xf32>
    %159 = vector.shape_cast %158 : vector<8xf32> to vector<8x1xf32>
    %160 = vector.broadcast %159 : vector<8x1xf32> to vector<8x8xf32>
    %161 = arith.divf %157, %160 : vector<8x8xf32>
    %cst_50 = arith.constant dense<0.000000e+00> : vector<8x8xf32>
    %162 = tpu.matmul %161, %146, %cst_50 {dimension_numbers = #tpu.dot_dimension_numbers<[1], [0], [0], [1], [0, 0, 1, 1], [], []>} : vector<8x8xf32>, vector<8x8xf32>, vector<8x8xf32> -> vector<8x8xf32>
    %163 = tpu.concatenate %57, %92, %127, %162 in 1 : vector<8x8xf32>, vector<8x8xf32>, vector<8x8xf32>, vector<8x8xf32> -> vector<8x32xf32>
    %c0_51 = arith.constant 0 : index
    %c0_52 = arith.constant 0 : index
    %164 = vector.load %arg8[%c0_51, %c0_52] : memref<32x32xf32, #tpu.memory_space<vmem>>, vector<32x32xf32>
    %cst_53 = arith.constant dense<0.000000e+00> : vector<8x32xf32>
    %165 = tpu.matmul %163, %164, %cst_53 {dimension_numbers = #tpu.dot_dimension_numbers<[1], [0], [0], [1], [0, 0, 1, 1], [], []>} : vector<8x32xf32>, vector<32x32xf32>, vector<8x32xf32> -> vector<8x32xf32>
    %166 = arith.addf %1, %165 : vector<8x32xf32>
    %167 = arith.mulf %166, %166 : vector<8x32xf32>
    %cst_54 = arith.constant dense<0.000000e+00> : vector<8xf32>
    %168 = vector.multi_reduction <add>, %167, %cst_54 [1] : vector<8x32xf32> to vector<8xf32>
    %169 = vector.shape_cast %168 : vector<8xf32> to vector<8x1xf32>
    %cst_55 = arith.constant 3.200000e+01 : f32
    %170 = vector.broadcast %cst_55 : f32 to vector<8x1xf32>
    %171 = arith.divf %169, %170 : vector<8x1xf32>
    %cst_56 = arith.constant 9.99999997E-7 : f32
    %172 = vector.broadcast %cst_56 : f32 to vector<8x1xf32>
    %173 = arith.addf %171, %172 : vector<8x1xf32>
    %174 = math.rsqrt %173 : vector<8x1xf32>
    %175 = vector.broadcast %174 : vector<8x1xf32> to vector<8x32xf32>
    %176 = arith.mulf %166, %175 : vector<8x32xf32>
    %c0_57 = arith.constant 0 : index
    %c0_58 = arith.constant 0 : index
    %177 = vector.load %arg6[%c0_57, %c0_58] : memref<1x32xf32, #tpu.memory_space<vmem>>, vector<1x32xf32>
    %178 = vector.broadcast %177 : vector<1x32xf32> to vector<8x32xf32>
    %179 = arith.mulf %176, %178 : vector<8x32xf32>
    %c0_59 = arith.constant 0 : index
    %c0_60 = arith.constant 0 : index
    %180 = vector.load %arg9[%c0_59, %c0_60] : memref<32x128xf32, #tpu.memory_space<vmem>>, vector<32x128xf32>
    %cst_61 = arith.constant dense<0.000000e+00> : vector<8x128xf32>
    %181 = tpu.matmul %179, %180, %cst_61 {dimension_numbers = #tpu.dot_dimension_numbers<[1], [0], [0], [1], [0, 0, 1, 1], [], []>} : vector<8x32xf32>, vector<32x128xf32>, vector<8x128xf32> -> vector<8x128xf32>
    %182 = vector.extract_strided_slice %181 {offsets = [0, 0], sizes = [8, 64], strides = [1, 1]} : vector<8x128xf32> to vector<8x64xf32>
    %183 = vector.extract_strided_slice %181 {offsets = [0, 64], sizes = [8, 64], strides = [1, 1]} : vector<8x128xf32> to vector<8x64xf32>
    %184 = arith.negf %182 : vector<8x64xf32>
    %185 = math.exp %184 : vector<8x64xf32>
    %cst_62 = arith.constant 1.000000e+00 : f32
    %186 = vector.broadcast %cst_62 : f32 to vector<8x64xf32>
    %187 = arith.addf %186, %185 : vector<8x64xf32>
    %188 = arith.divf %186, %187 : vector<8x64xf32>
    %189 = arith.mulf %182, %188 : vector<8x64xf32>
    %190 = arith.mulf %189, %183 : vector<8x64xf32>
    %c0_63 = arith.constant 0 : index
    %c0_64 = arith.constant 0 : index
    %191 = vector.load %arg10[%c0_63, %c0_64] : memref<64x32xf32, #tpu.memory_space<vmem>>, vector<64x32xf32>
    %cst_65 = arith.constant dense<0.000000e+00> : vector<8x32xf32>
    %192 = tpu.matmul %190, %191, %cst_65 {dimension_numbers = #tpu.dot_dimension_numbers<[1], [0], [0], [1], [0, 0, 1, 1], [], []>} : vector<8x64xf32>, vector<64x32xf32>, vector<8x32xf32> -> vector<8x32xf32>
    %193 = arith.addf %166, %192 : vector<8x32xf32>
    %c0_66 = arith.constant 0 : index
    %c0_67 = arith.constant 0 : index
    %c0_68 = arith.constant 0 : index
    %194 = vector.load %arg11[%c0_66, %c0_67, %c0_68] : memref<1x8x32xf32, #tpu.memory_space<vmem>>, vector<1x8x32xf32>
    %195 = vector.shape_cast %194 : vector<1x8x32xf32> to vector<8x32xf32>
    %196 = vector.shape_cast %193 : vector<8x32xf32> to vector<1x8x32xf32>
    tpu.vector_store %arg11[%c0_66, %c0_67, %c0_68], %196 {strides = array<i32>} : memref<1x8x32xf32, #tpu.memory_space<vmem>>, vector<1x8x32xf32>,
    return
  }
  func.func @transform_0(%arg0: i32) -> (i32, i32, i32) {
    %c0_i32 = arith.constant 0 : i32
    %c0_i32_0 = arith.constant 0 : i32
    %c0_i32_1 = arith.constant 0 : i32
    return %arg0, %c0_i32, %c0_i32_0 : i32, i32, i32
  }
  func.func @transform_1(%arg0: i32) -> (i32, i32, i32) {
    %c0_i32 = arith.constant 0 : i32
    %c0_i32_0 = arith.constant 0 : i32
    %c0_i32_1 = arith.constant 0 : i32
    return %arg0, %c0_i32, %c0_i32_0 : i32, i32, i32
  }
  func.func @transform_2(%arg0: i32) -> (i32, i32, i32) {
    %c0_i32 = arith.constant 0 : i32
    %c0_i32_0 = arith.constant 0 : i32
    %c0_i32_1 = arith.constant 0 : i32
    return %arg0, %c0_i32, %c0_i32_0 : i32, i32, i32
  }
  func.func @transform_3(%arg0: i32) -> (i32, i32, i32, i32) {
    %c0_i32 = arith.constant 0 : i32
    %c0_i32_0 = arith.constant 0 : i32
    %c0_i32_1 = arith.constant 0 : i32
    %c0_i32_2 = arith.constant 0 : i32
    return %arg0, %c0_i32, %c0_i32_0, %c0_i32_1 : i32, i32, i32, i32
  }
  func.func @transform_4(%arg0: i32) -> (i32, i32) {
    %c0_i32 = arith.constant 0 : i32
    %c0_i32_0 = arith.constant 0 : i32
    %c0_i32_1 = arith.constant 0 : i32
    return %c0_i32, %c0_i32_0 : i32, i32
  }
  func.func @transform_5(%arg0: i32) -> (i32, i32) {
    %c0_i32 = arith.constant 0 : i32
    %c0_i32_0 = arith.constant 0 : i32
    %c0_i32_1 = arith.constant 0 : i32
    return %c0_i32, %c0_i32_0 : i32, i32
  }
  func.func @transform_6(%arg0: i32) -> (i32, i32) {
    %c0_i32 = arith.constant 0 : i32
    %c0_i32_0 = arith.constant 0 : i32
    %c0_i32_1 = arith.constant 0 : i32
    return %c0_i32, %c0_i32_0 : i32, i32
  }
  func.func @transform_7(%arg0: i32) -> (i32, i32) {
    %c0_i32 = arith.constant 0 : i32
    %c0_i32_0 = arith.constant 0 : i32
    %c0_i32_1 = arith.constant 0 : i32
    return %c0_i32, %c0_i32_0 : i32, i32
  }
  func.func @transform_8(%arg0: i32) -> (i32, i32) {
    %c0_i32 = arith.constant 0 : i32
    %c0_i32_0 = arith.constant 0 : i32
    %c0_i32_1 = arith.constant 0 : i32
    return %c0_i32, %c0_i32_0 : i32, i32
  }
  func.func @transform_9(%arg0: i32) -> (i32, i32) {
    %c0_i32 = arith.constant 0 : i32
    %c0_i32_0 = arith.constant 0 : i32
    %c0_i32_1 = arith.constant 0 : i32
    return %c0_i32, %c0_i32_0 : i32, i32
  }
  func.func @transform_10(%arg0: i32) -> (i32, i32, i32) {
    %c0_i32 = arith.constant 0 : i32
    %c0_i32_0 = arith.constant 0 : i32
    %c0_i32_1 = arith.constant 0 : i32
    return %arg0, %c0_i32, %c0_i32_0 : i32, i32, i32
  }
}

</mosaic_0001>

<bundles_post_ra>
// kernel: tpu_custom_call.1
= control target key start
LH: loop header
LB: loop body
LE: loop exit
PB: predicated region body
PF: predicated region fallthrough
CT: control target
= control target key end

     0   :  { %s2873_s0 = inlined_call_operand.hbm [shape: f32[2,8,32], index: 0, kind: input, shape index: {}]   ;;  %s2874_s1 = inlined_call_operand.hbm [shape: f32[2,8,8], index: 1, kind: input, shape index: {}]   ;;  %s2875_s2 = inlined_call_operand.hbm [shape: f32[2,8,8], index: 2, kind: input, shape index: {}]   ;;  %s2876_s3 = inlined_call_operand.hbm [shape: f32[2,1,8,8], index: 3, kind: input, shape index: {}]   ;;  %s2877_s4 = inlined_call_operand.vmem [shape: f32[1,32], index: 4, kind: input, shape index: {}]   ;;  %s2878_s5 = inlined_call_operand.vmem [shape: f32[1,32], index: 5, kind: input, shape index: {}]   ;;  %s2879_s6 = inlined_call_operand.vmem [shape: f32[32,96], index: 6, kind: input, shape index: {}]   ;;  %s2880_s7 = inlined_call_operand.vmem [shape: f32[32,32], index: 7, kind: input, shape index: {}]   ;;  %s2881_s8 = inlined_call_operand.vmem [shape: f32[32,128], index: 8, kind: input, shape index: {}]   ;;  %s2882_s9 = inlined_call_operand.vmem [shape: f32[64,32], index: 9, kind: input, shape index: {}]   ;;  %s2883_s10 = inlined_call_operand.hbm [shape: f32[2,8,32], index: 10, kind: output, shape index: {}]  }
   0x1   :  { %2896 = sst [smem:[#allocation22_spill]] %s2873_s0 }
   0x2   :  { %2897 = sst [smem:[#allocation23_spill]] %s2874_s1 }
   0x3   :  { %2898 = sst [smem:[#allocation24_spill]] %s2882_s9 }
   0x4   :  { %2899 = sst [smem:[#allocation25_spill]] %s2883_s10 }
   0x5   :  { %15 = vsyncpa [#allocation3], 0 }
   0x6   :  { %17 = vsyncpa [#allocation3 + $0x1], 0 }
   0x7   :  { %18 = vsyncpa [#allocation6], 0 }
   0x8   :  { %20 = vsyncpa [#allocation6 + $0x1], 0 }
   0x9   :  { %21 = vsyncpa [#allocation9], 0 }
   0xa   :  { %23 = vsyncpa [#allocation9 + $0x1], 0 }
   0xb   :  { %24 = vsyncpa [#allocation4], 0 }
   0xc   :  { %26 = vsyncpa [#allocation4 + $0x1], 0  ;;  %s2384_s13 = smov 0   ;;  %s2386_s14 = smov 0  }
   0xd   :  { %s2388_s15 = smov 0   ;;  %s2390_s16 = smov 0  }
   0xe LB: > { %2900 = sst [smem:[#allocation15_spill]] %s2284_s13  ;;  %s2405_s17 = sadd.s32 4294967295, %s2296_s16   ;;  %s2296_s16 = sphi %s2390_s16, %s2928_s16   ;;  %s2292_s15 = sphi %s2388_s15, %s2930_s15   ;;  %s2288_s14 = sphi %s2386_s14, %s2932_s14   ;;  %s2284_s13 = sphi %s2384_s13, %s2931_s13  }
   0xf   : > { %2901 = sst [smem:[#allocation16_spill]] %s2292_s15  ;;  %s1829_s18 = sadd.s32 4294967294, %s2296_s16  }
  0x10   : > { %2902 = sst [smem:[#allocation17_spill]] %s2296_s16  ;;  %s2409_s19 = sadd.s32 1, %s2296_s16  }
  0x11   : > { %2903 = sst [smem:[#allocation18_spill]] %s2409_s19  ;;  %s39_s20 = sadd.s32 1, %s2292_s15 }
  0x12   : > { %s36_s21 = ssub.s32 %s2296_s16, %s2409_s19  ;;  %p46_p0 = scmp.ne.s32.totalorder %s2292_s15, %s2288_s14 }
  0x13   : > { %p37_p1 = scmp.eq.s32.totalorder %s36_s21, 0  ;;  %p47_p2 = scmp.eq.s32.totalorder %s2296_s16, 0 }
  0x14   : > { %p52_p3 = scmp.ne.s32.totalorder %s2288_s14, %s2284_s13  ;;  %p53_p4 = scmp.eq.s32.totalorder %s2405_s17, 0 }
  0x15   : > { %s2421_s22 = scalar_select %p37_p1, %s2292_s15, %s39_s20  }
  0x16   : > { %p48_p5 = por %p47_p2, %p46_p0  ;;  %p2423_p6 = por %p53_p4, %p52_p3 }
  0x17   : > { %2904 = sst [smem:[#allocation19_spill]] %s2421_s22  ;;  %p280_p7 = scmp.eq.s32.totalorder %s2405_s17, 1 }
  0x18   : > { %s2905_s23 = scalar_select %p2423_p6, 1, 0 }
  0x19   : > { %p286_p8 = scmp.eq.s32.totalorder %s1829_s18, 1  ;;  %p2028_p10 = scmp.lt.s32.totalorder %s2296_s16, 2 }
  0x1a   : > { %p2430_p11 = por %p280_p7, %p46_p0  ;;  %s2439_s26 = sand.u32 1, %s2292_s15  }
  0x1b   : > { %p2434_p12 = por %p286_p8, %p52_p3  ;;  %s2442_s27 = sshll.u32 %s2296_s16, 7 }
  0x1c   : > { %s2906_s24 = scalar_select %p2430_p11, 1, 0 }
  0x1d   : > { %s2908_s25 = scalar_select %p2434_p12, 1, 0 }
  0x1e   : > { %2907 = sst [smem:[#allocation20_spill]] %s2906_s24  ;;  %s2445_s28 = sshll.u32 %s2439_s26, 3 }
  0x1f   : > { %2909 = sst [smem:[#allocation21_spill]] %s2908_s25  ;;  %p2447_p13 = pnand %p2028_p10, %p48_p5 }
  0x20   : > { %s342_s30 = sand.u32 1, %s2296_s16   ;;  %s2911_s1 = sld [smem:[#allocation23_spill]] }
  0x21   : > { %s346_s20 = scalar_lea.vmem [#allocation5], %s2445_s28  ;;  %s2460_s22 = scalar_lea.sflag [#allocation6], %s342_s30 }
  0x22   : > { %s353_s21 = sshll.u32 %s346_s20, 4  ;;  %p2466_p2 = pneg %p2447_p13  ;;  %s354_s21 = int_to_ptr.vmem [resolvable:$true] %s353_s21 }
  0x26   : > { %s2456_s18 = scalar_lea.hbm %s2911_s1, %s2442_s27  ;;  %s2117_s25 = scalar_lea.hbm %s2911_s1, 256 }
  0x27   : > { %s2112_s15 = scalar_lea.hbm %s2456_s18, 128  ;;  %p2118_p5 = scmp.lt.s32.totalorder %s2456_s18, %s2911_s1 }
  0x28   : > { %p2113_p1 = scmp.ne.s32.totalorder %s2456_s18, %s2112_s15  ;;  %p2119_p7 = scmp.lt.s32.totalorder %s2117_s25, %s2112_s15 }
  0x2a   : > { %p2115_p3 = pnand %p2466_p2, %p2113_p1  ;;  %p2120_p8 = por %p2119_p7, %p2118_p5 }
  0x2c   : > { %p2116_p4 = pneg %p2115_p3 }
  0x2e   : > { %p2121_p10 = pnand %p2120_p8, %p2116_p4 }
  0x30   : > { %2124 = shalt.err (!%p2121_p10)
}
  0x31   : > { %s2125_s30 = scalar_lea.vmem %s354_s21, 128  ;;  %s2298_s10 = smov [#allocation5]  }
  0x32   : > { %p2126_p9 = scmp.ne.s32.totalorder %s354_s21, %s2125_s30  ;;  %s2130_s24 = sshll.u32 %s2298_s10, 4  ;;  %s2131_s24 = int_to_ptr.vmem [resolvable:$false] %s2130_s24 }
  0x33   : > { %s2132_s9 = scalar_lea.vmem %s2131_s24, 256  ;;  %p2133_p1 = scmp.lt.s32.totalorder %s354_s21, %s2131_s24 }
  0x34   : > { %p2128_p0 = pnand %p2126_p9, %p2466_p2  ;;  %p2134_p3 = scmp.lt.s32.totalorder %s2132_s9, %s2125_s30 }
  0x36   : > { %p2129_p12 = pneg %p2128_p0  ;;  %p2135_p11 = por %p2134_p3, %p2133_p1 }
  0x38   : > { %p2136_p6 = pnand %p2135_p11, %p2129_p12 }
  0x3a   : > { %2139 = shalt.err (!%p2136_p6)
}
  0x3b   : > { %2017 = dma.hbm_to_vmem [thread:$0]  (!%p2447_p13), %s2456_s18, 128, %s354_s21, %s2460_s22  }
  0x3c   : > { %p394_p9 = scmp.lt.s32.totalorder %s2296_s16, 3  ;;  %s2913_s0 = sld [smem:[#allocation22_spill]] }
  0x3d   : > { %p2914_p0 = scmp.ge.s32.totalorder %s2296_s16, 1  ;;  %s328_s24 = scalar_lea.vmem [#allocation2], %s2445_s28 }
  0x3e   : > { %s335_s25 = sshll.u32 %s328_s24, 4  ;;  %s325_s11 = scalar_lea.sflag [#allocation3], %s2439_s26  ;;  %s336_s25 = int_to_ptr.vmem [resolvable:$true] %s335_s25 }
  0x3f   : > { %p2494_p6 = pnand %p2914_p0, %p394_p9 }
  0x41   : > { %s2915_s9 = scalar_select %p2494_p6, 1, 0 }
  0x42   : > { %s2490_s15 = scalar_lea.hbm %s2913_s0, %s2442_s27  ;;  %s2145_s20 = scalar_lea.hbm %s2913_s0, 256 }
  0x43   : > { %s2140_s12 = scalar_lea.hbm %s2490_s15, 128  ;;  %p2146_p5 = scmp.lt.s32.totalorder %s2490_s15, %s2913_s0 }
  0x44   : > { %p2141_p11 = scmp.ne.s32.totalorder %s2490_s15, %s2140_s12  ;;  %p2147_p7 = scmp.lt.s32.totalorder %s2145_s20, %s2140_s12 }
  0x46   : > { %p2143_p12 = pnand %p2141_p11, %p2466_p2  ;;  %p2148_p8 = por %p2147_p7, %p2146_p5 }
  0x48   : > { %p2144_p4 = pneg %p2143_p12 }
  0x4a   : > { %p2149_p10 = pnand %p2148_p8, %p2144_p4 }
  0x4c   : > { %2152 = shalt.err (!%p2149_p10)
}
  0x4d   : > { %s2153_s13 = scalar_lea.vmem %s336_s25, 128  ;;  %s2299_s24 = smov [#allocation2]  }
  0x4e   : > { %p2154_p1 = scmp.ne.s32.totalorder %s336_s25, %s2153_s13  ;;  %s2158_s1 = sshll.u32 %s2299_s24, 4  ;;  %s2159_s1 = int_to_ptr.vmem [resolvable:$false] %s2158_s1 }
  0x4f   : > { %s2160_s16 = scalar_lea.vmem %s2159_s1, 256  ;;  %p2161_p0 = scmp.lt.s32.totalorder %s336_s25, %s2159_s1 }
  0x50   : > { %p2156_p3 = pnand %p2154_p1, %p2466_p2  ;;  %p2162_p11 = scmp.lt.s32.totalorder %s2160_s16, %s2153_s13 }
  0x52   : > { %p2157_p9 = pneg %p2156_p3  ;;  %p2163_p12 = por %p2162_p11, %p2161_p0 }
  0x54   : > { %p2164_p6 = pnand %p2163_p12, %p2157_p9 }
  0x56   : > { %2167 = shalt.err (!%p2164_p6)
}
  0x57   : > { %2014 = dma.hbm_to_vmem [thread:$0]  (!%p2447_p13), %s2490_s15, 128, %s336_s25, %s325_s11  }
  0x58   : > { %s369_s21 = scalar_lea.hbm %s2875_s2, %s2442_s27  ;;  %s364_s20 = scalar_lea.vmem [#allocation7], %s2445_s28 }
  0x59   : > { %s371_s30 = sshll.u32 %s364_s20, 4  ;;  %s2168_s10 = scalar_lea.hbm %s369_s21, 128  ;;  %s372_s30 = int_to_ptr.vmem [resolvable:$true] %s371_s30 }
  0x5a   : > { %p2169_p4 = scmp.ne.s32.totalorder %s369_s21, %s2168_s10  ;;  %s2173_s13 = scalar_lea.hbm %s2875_s2, 256 }
  0x5b   : > { %p2174_p6 = scmp.lt.s32.totalorder %s369_s21, %s2875_s2  ;;  %p2175_p8 = scmp.lt.s32.totalorder %s2173_s13, %s2168_s10 }
  0x5c   : > { %p2171_p5 = pnand %p2169_p4, %p2466_p2 }
  0x5d   : > { %p2176_p10 = por %p2175_p8, %p2174_p6 }
  0x5e   : > { %p2172_p7 = pneg %p2171_p5 }
  0x60   : > { %p2177_p1 = pnand %p2176_p10, %p2172_p7 }
  0x62   : > { %2180 = shalt.err (!%p2177_p1)
}
  0x63   : > { %s2181_s15 = scalar_lea.vmem %s372_s30, 128  ;;  %s2300_s25 = smov [#allocation7]  }
  0x64   : > { %p2182_p3 = scmp.ne.s32.totalorder %s372_s30, %s2181_s15  ;;  %s2186_s11 = sshll.u32 %s2300_s25, 4  ;;  %s2187_s11 = int_to_ptr.vmem [resolvable:$false] %s2186_s11 }
  0x65   : > { %s2188_s12 = scalar_lea.vmem %s2187_s11, 256  ;;  %p2189_p11 = scmp.lt.s32.totalorder %s372_s30, %s2187_s11 }
  0x66   : > { %p2184_p9 = pnand %p2182_p3, %p2466_p2  ;;  %p2190_p12 = scmp.lt.s32.totalorder %s2188_s12, %s2181_s15 }
  0x68   : > { %p2185_p0 = pneg %p2184_p9  ;;  %p2191_p4 = por %p2190_p12, %p2189_p11 }
  0x6a   : > { %p2192_p5 = pnand %p2191_p4, %p2185_p0 }
  0x6c   : > { %2195 = shalt.err (!%p2192_p5)
}
  0x6d   : > { %2020 = dma.hbm_to_vmem [thread:$0]  (!%p2447_p13), %s369_s21, 128, %s372_s30, %s2460_s22  }
  0x6e   : > { %s2538_s20 = scalar_lea.hbm %s2876_s3, %s2442_s27  ;;  %s382_s10 = scalar_lea.vmem [#allocation8], %s2445_s28 }
  0x6f   : > { %s389_s1 = sshll.u32 %s382_s10, 4  ;;  %s379_s16 = scalar_lea.sflag [#allocation9], %s2439_s26  ;;  %s390_s1 = int_to_ptr.vmem [resolvable:$true] %s389_s1 }
  0x70   : > { %s2196_s13 = scalar_lea.hbm %s2538_s20, 128  ;;  %s2201_s22 = scalar_lea.hbm %s2876_s3, 256 }
  0x71   : > { %p2197_p7 = scmp.ne.s32.totalorder %s2538_s20, %s2196_s13  ;;  %p2202_p10 = scmp.lt.s32.totalorder %s2538_s20, %s2876_s3 }
  0x72   : > { %p2203_p1 = scmp.lt.s32.totalorder %s2201_s22, %s2196_s13 }
  0x73   : > { %p2199_p6 = pnand %p2197_p7, %p2466_p2 }
  0x74   : > { %p2204_p3 = por %p2203_p1, %p2202_p10 }
  0x75   : > { %p2200_p8 = pneg %p2199_p6 }
  0x77   : > { %p2205_p9 = pnand %p2204_p3, %p2200_p8 }
  0x79   : > { %2208 = shalt.err (!%p2205_p9)
}
  0x7a   : > { %s2209_s27 = scalar_lea.vmem %s390_s1, 128  ;;  %s2301_s26 = smov [#allocation8]  }
  0x7b   : > { %p2210_p0 = scmp.ne.s32.totalorder %s390_s1, %s2209_s27  ;;  %s2214_s28 = sshll.u32 %s2301_s26, 4  ;;  %s2215_s28 = int_to_ptr.vmem [resolvable:$false] %s2214_s28 }
  0x7c   : > { %s2216_s25 = scalar_lea.vmem %s2215_s28, 256  ;;  %p2217_p4 = scmp.lt.s32.totalorder %s390_s1, %s2215_s28 }
  0x7d   : > { %p2212_p11 = pnand %p2210_p0, %p2466_p2  ;;  %p2218_p5 = scmp.lt.s32.totalorder %s2216_s25, %s2209_s27 }
  0x7f   : > { %p2213_p12 = pneg %p2212_p11  ;;  %p2219_p7 = por %p2218_p5, %p2217_p4 }
  0x81   : > { %p2220_p6 = pnand %p2219_p7, %p2213_p12 }
  0x83   : > { %2223 = shalt.err (!%p2220_p6)
}
  0x84   : > { %2023 = dma.hbm_to_vmem [thread:$0]  (!%p2447_p13), %s2538_s20, 128, %s390_s1, %s379_s16  }
  0x85   : > { %p2916_p8 = scmp.ne.s32.totalorder %s2915_s9, 0 }
  0x86   : > { %s2561_s19 = sand.u32 (!%p2916_p8), 1, %s2288_s14   ;;  %p2917_p2 = scmp.ne.s32.totalorder (!%p2916_p8), %s2905_s23, 0 }
  0x87   : > { %398 = sbr.rel (%p2916_p8) target bundleno = 2612 (0xa34), region = 60  ;;  %s2564_s11 = sshll.u32 (!%p2916_p8), %s2561_s19, 3 }
  0x88   : > { %s401_s12 = scalar_lea.sflag (!%p2916_p8), [#allocation3], %s2561_s19  ;;  %s404_s0 = scalar_lea.vmem (!%p2916_p8), [#allocation2], %s2564_s11 }
  0x8c   : > { %2267 = dma.done.wait (%p2917_p2), %s401_s12, 128  }
  0x8d   : > { %2269 = vsyncadd (%p2917_p2), %s401_s12, 4294967168  ;;  %s409_s29 = sand.u32 1, %s2405_s17   ;;  %s413_s18 = scalar_lea.vmem [#allocation5], %s2564_s11 }
  0x8e   : > { %s410_s9 = scalar_lea.sflag [#allocation6], %s409_s29 }
  0x8f   : > { %2271 = dma.done.wait (%p2917_p2), %s410_s9, 256  }
  0x90   : > { %2273 = vsyncadd (%p2917_p2), %s410_s9, 4294967040  ;;  %s422_s20 = scalar_lea.vmem [#allocation7], %s2564_s11  ;;  %s428_s10 = scalar_lea.sflag [#allocation9], %s2561_s19 }
  0x91   : > { %s431_s1 = scalar_lea.vmem [#allocation8], %s2564_s11 }
  0x92   : > { %2275 = dma.done.wait (%p2917_p2), %s428_s10, 128  }
  0x93   : > { %2277 = vsyncadd (%p2917_p2), %s428_s10, 4294967168  ;;  %v2585_v0 = vld [vmem:[%s404_s0] sm:$0xff]  ;;  %vm488_vm0 = vcmask 261120   ;;  %v508_v3 = vld [vmem:[%s2879_s6 + $0x18] sm:$0xff]  ;;  %v2302_v4 = vmov 0.0   ;;  %vm2303_vm1 = vmmov 0  }
  0x94   : > { %v487_v1 = vmul.f32 %v2585_v0, %v2585_v0  ;;  %1909 = vmatprep.subr.mxu1 %v2302_v4  ;;  %v507_v5 = vld [vmem:[%s2879_s6 + $0x10] sm:$0xff]  ;;  %1917 = vmatprep.mubr.msk.f32.mxu1 %vm2303_vm1, %v2302_v4  ;;  %v506_v6 = vld [vmem:[%s2879_s6 + $0x8] sm:$0xff]  ;;  %v505_v7 = vld [vmem:[%s2879_s6] sm:$0xff]  ;;  %s2304_s28 = smov 100   ;;  %s2305_s25 = smov 92   ;;  %vm591_vm2 = vcmask 31744  }
  0x95   : > { %1910 = vmatpush3.msra.mxu1 %v508_v3  ;;  %1930 = vmatprep.subr.mxu0 %v2302_v4  ;;  %v1846_v12 = vld [vmem:[%s2877_s4] ss:$0 sm:$0xff]  ;;  %s2306_s12 = smov 108   ;;  %s2307_s0 = smov 124   ;;  %v2636_v18 = vld [vmem:[%s413_s18] sm:$0xff]  ;;  %vm617_vm3 = vcmask 64512  }
  0x96   : > { %v489_v2 = vsel %vm488_vm0, %v487_v1, 0.0  ;;  %1911 = vmatprep.subr.mxu1 %v2302_v4  ;;  %1932 = vmatprep.mubr.msk.f32.mxu0 %vm2303_vm1, %v2302_v4  ;;  %s2308_s29 = smov 68   ;;  %s2309_s9 = smov 84   ;;  %v2656_v20 = vld [vmem:[%s422_s20] sm:$0xff]  ;;  %vm1408_vm4 = vcmask 130048   ;;  %vm1410_vm5 = vcmask 195584  }
  0x97   : > { %490 = vadd.xlane.f32.xlu0 %v489_v2  ;;  %1912 = vmatpush3.msra.mxu1 %v507_v5  ;;  %s2310_s10 = smov 116   ;;  %s2311_s16 = smov 32   ;;  %vm1603_vm6 = vcmask 523264  }
  0x98   : > { %1913 = vmatprep.subr.mxu1 %v2302_v4  ;;  %s2312_s13 = smov 40   ;;  %s2313_s24 = smov 8  }
  0x99   : > { %1914 = vmatpush3.msra.mxu1 %v506_v6  ;;  %s2314_s15 = smov 76   ;;  %s2315_s18 = smov 16  }
  0x9a   : > { %1915 = vmatprep.subr.mxu1 %v2302_v4  ;;  %s2316_s23 = smov 48   ;;  %s2317_s22 = smov 56  }
  0x9b   : > { %1916 = vmatpush3.msra.mxu1 %v505_v7  ;;  %s2318_s20 = smov 24   ;;  %s2319_s21 = smov 4  }
  0x9c   : > { %1920 = vmatprep.subr.mxu1 %v2302_v4  ;;  %s2320_s30 = smov 96   ;;  %s2321_s27 = smov 88  }
  0x9d   : > { %s2322_s26 = smov 120  }
 0x120   : > { %v491_v8 = vpop.xlane.xlu0 %490 }
 0x121   : > { %v493_v9 = vmul.f32 0.03125, %v491_v8 }
 0x123   : > { %v494_v10 = vadd.f32 1e-06, %v493_v9 }
 0x125   : > { %2088 = vrsqrt.f32 %v494_v10 }
 0x132   : > { %v2089_v11 = vpop.eup %2088 }
 0x133   : > { %v496_v13 = vmul.f32 %v2089_v11, %v2585_v0 }
 0x135   : > { %v504_v14 = vmul.f32 %v1846_v12, %v496_v13 }
 0x137   : > { %1918 = vmatmul.mubr.msk.f32.vlgmr.msra.gmra.mxu1 %vm488_vm0, %v504_v14 }
 0x138   : > { %1922 = vmatprep.mubr.msk.f32.mxu1 %vm2303_vm1, %v2302_v4 }
 0x1f7   : > { %v2619_v15 = vpop.f32.mrf.mxu1 }
 0x1f8   : > { %599 = vrot.lane.b32.xlu1 %v2619_v15, %s2304_s28  ;;  %v2623_v16 = vsub.f32 0.0, %v2619_v15 }
 0x1f9   : > { %v1919_v17 = vpop.f32.mrf.mxu1 }
 0x1fa   : > { %596 = vrot.lane.b32.xlu0 %v2623_v16, %s2305_s25 }
 0x1fc   : > { %803 = vrot.lane.b32.xlu1 %v2619_v15, %s2305_s25  ;;  %s2324_s25 = smov 112  }
 0x1fe   : > { %987 = vrot.lane.b32.xlu0 %v2623_v16, %s2306_s12 }
 0x200   : > { %786 = vrot.lane.b32.xlu1 %v2619_v15, %s2307_s0 }
 0x202   : > { %1208 = vrot.lane.b32.xlu0 %v2623_v16, %s2308_s29 }
 0x204   : > { %1007 = vrot.lane.b32.xlu1 %v2619_v15, %s2309_s9 }
 0x206   : > { %1191 = vrot.lane.b32.xlu0 %v2623_v16, %s2304_s28  ;;  %s2323_s28 = smov 80  }
 0x208   : > { %990 = vrot.lane.b32.xlu1 %v2619_v15, %s2310_s10 }
 0x20a   : > { %604 = vrot.lane.b32.xlu0 %v2636_v18, %s2311_s16 }
 0x20c   : > { %800 = vrot.lane.b32.xlu1 %v2623_v16, %s2309_s9  ;;  %s2918_s9 = sld [smem:[#allocation24_spill]] }
 0x20e   : > { %807 = vrot.lane.b32.xlu0 %v2636_v18, %s2312_s13 }
 0x210   : > { %783 = vrot.lane.b32.xlu1 %v2623_v16, %s2310_s10 }
 0x212   : > { %790 = vrot.lane.b32.xlu0 %v2636_v18, %s2313_s24 }
 0x214   : > { %1004 = vrot.lane.b32.xlu1 %v2623_v16, %s2314_s15 }
 0x216   : > { %994 = vrot.lane.b32.xlu0 %v2636_v18, %s2315_s18 }
 0x218   : > { %1211 = vrot.lane.b32.xlu1 %v2619_v15, %s2314_s15  ;;  %s1680_s15 = scalar_lea.sflag [#allocation4], %s2561_s19 }
 0x21c   : > { %1194 = vrot.lane.b32.xlu1 %v2619_v15, %s2306_s12  ;;  %s2325_s12 = smov 72  }
 0x220   : > { %1011 = vrot.lane.b32.xlu1 %v2636_v18, %s2316_s23 }
 0x224   : > { %1215 = vrot.lane.b32.xlu1 %v2636_v18, %s2317_s22 }
 0x26a   : > { %v600_v19 = vpop.permute.xlu1 %599 }
 0x26c   : > { %v597_v21 = vpop.permute.xlu0 %596 }
 0x26d   : > { %v602_v22 = vsel %vm591_vm2, %v597_v21, %v600_v19  ;;  %v593_v21 = vmul.f32 %v2619_v15, %v2636_v18 }
 0x26e   : > { %v608_v23 = vmul.f32 %v602_v22, %v2656_v20  ;;  %v804_v24 = vpop.permute.xlu1 %803 }
 0x270   : > { %610 = vrot.lane.b32.xlu1 %v608_v23, %s2311_s16  ;;  %v988_v31 = vpop.permute.xlu0 %987  ;;  %s2920_s16 = sld [smem:[#allocation25_spill]] }
 0x272   : > { %v787_v25 = vpop.permute.xlu1 %786 }
 0x274   : > { %v1209_v38 = vpop.permute.xlu0 %1208 }
 0x276   : > { %v1008_v26 = vpop.permute.xlu1 %1007 }
 0x278   : > { %v1192_v44 = vpop.permute.xlu0 %1191 }
 0x27a   : > { %v991_v27 = vpop.permute.xlu1 %990 }
 0x27b   : > { %v993_v35 = vsel %vm591_vm2, %v988_v31, %v991_v27 }
 0x27c   : > { %v998_v39 = vmul.f32 %v993_v35, %v2656_v20  ;;  %v605_v49 = vpop.permute.xlu0 %604 }
 0x27d   : > { %v607_v51 = vmul.f32 %v605_v49, %v2619_v15 }
 0x27e   : > { %v801_v28 = vpop.permute.xlu1 %800 }
 0x27f   : > { %v806_v29 = vsel %vm591_vm2, %v801_v28, %v804_v24  ;;  %v486_v28 = vld [vmem:[%s431_s1] sm:$0xff]  ;;  %s2327_s1 = smov 64  }
 0x280   : > { %v811_v30 = vmul.f32 %v806_v29, %v2656_v20  ;;  %v808_v54 = vpop.permute.xlu0 %807 }
 0x281   : > { %v810_v56 = vmul.f32 %v808_v54, %v2619_v15 }
 0x282   : > { %v784_v32 = vpop.permute.xlu1 %783  ;;  %813 = vrot.lane.b32.xlu1 %v811_v30, %s2312_s13 }
 0x283   : > { %v789_v33 = vsel %vm591_vm2, %v784_v32, %v787_v25 }
 0x284   : > { %v794_v34 = vmul.f32 %v789_v33, %v2656_v20  ;;  %v791_v55 = vpop.permute.xlu0 %790 }
 0x285   : > { %v793_v60 = vmul.f32 %v791_v55, %v2619_v15 }
 0x286   : > { %v1005_v36 = vpop.permute.xlu1 %1004  ;;  %796 = vrot.lane.b32.xlu0 %v794_v34, %s2313_s24 }
 0x287   : > { %v1010_v37 = vsel %vm591_vm2, %v1005_v36, %v1008_v26 }
 0x288   : > { %v1015_v40 = vmul.f32 %v1010_v37, %v2656_v20  ;;  %v995_v57 = vpop.permute.xlu0 %994 }
 0x289   : > { %v997_v63 = vmul.f32 %v995_v57, %v2619_v15 }
 0x28a   : > { %v1212_v41 = vpop.permute.xlu1 %1211  ;;  %1017 = vrot.lane.b32.xlu1 %v1015_v40, %s2316_s23  ;;  %1000 = vrot.lane.b32.xlu0 %v998_v39, %s2315_s18 }
 0x28b   : > { %v1214_v42 = vsel %vm591_vm2, %v1209_v38, %v1212_v41 }
 0x28c   : > { %v1219_v43 = vmul.f32 %v1214_v42, %v2656_v20 }
 0x28e   : > { %v1195_v45 = vpop.permute.xlu1 %1194  ;;  %1198 = vrot.lane.b32.xlu0 %v2636_v18, %s2318_s20  ;;  %1221 = vrot.lane.b32.xlu1 %v1219_v43, %s2317_s22 }
 0x28f   : > { %v1197_v46 = vsel %vm591_vm2, %v1192_v44, %v1195_v45 }
 0x290   : > { %v1202_v47 = vmul.f32 %v1197_v46, %v2656_v20 }
 0x292   : > { %584 = vrot.lane.b32.xlu0 %v2623_v16, %s2307_s0  ;;  %1204 = vrot.lane.b32.xlu1 %v1202_v47, %s2318_s20  ;;  %v1012_v48 = vpop.permute.xlu1 %1011  ;;  %s2326_s0 = smov 104  }
 0x293   : > { %v1014_v1 = vmul.f32 %v1012_v48, %v2619_v15 }
 0x296   : > { %588 = vrot.lane.b32.xlu1 %v2619_v15, %s2319_s21  ;;  %v1216_v50 = vpop.permute.xlu1 %1215 }
 0x297   : > { %v1218_v7 = vmul.f32 %v1216_v50, %v2619_v15 }
 0x2e2   : > { %v611_v52 = vpop.permute.xlu1 %610 }
 0x2e3   : > { %v613_v53 = vadd.f32 %v611_v52, %v607_v51 }
 0x2e5   : > { %615 = vrot.lane.b32.xlu0 %v613_v53, %s2320_s30 }
 0x2f4   : > { %v814_v58 = vpop.permute.xlu1 %813 }
 0x2f5   : > { %v816_v59 = vadd.f32 %v814_v58, %v810_v56 }
 0x2f7   : > { %821 = vrot.lane.b32.xlu1 %v816_v59, %s2321_s27 }
 0x2f8   : > { %v797_v61 = vpop.permute.xlu0 %796 }
 0x2f9   : > { %v799_v62 = vadd.f32 %v797_v61, %v793_v60 }
 0x2fb   : > { %818 = vrot.lane.b32.xlu0 %v799_v62, %s2322_s26 }
 0x2fc   : > { %v1018_v2 = vpop.permute.xlu1 %1017  ;;  %v1001_v3 = vpop.permute.xlu0 %1000 }
 0x2fd   : > { %v1020_v5 = vadd.f32 %v1018_v2, %v1014_v1  ;;  %v1003_v6 = vadd.f32 %v1001_v3, %v997_v63 }
 0x2ff   : > { %1025 = vrot.lane.b32.xlu1 %v1020_v5, %s2323_s28  ;;  %1022 = vrot.lane.b32.xlu0 %v1003_v6, %s2324_s25  ;;  %s2919_s25 = sld [smem:[#allocation20_spill]] }
 0x300   : > { %v1222_v8 = vpop.permute.xlu1 %1221  ;;  %v1199_v9 = vpop.permute.xlu0 %1198 }
 0x301   : > { %v1224_v10 = vadd.f32 %v1222_v8, %v1218_v7  ;;  %v1201_v11 = vmul.f32 %v1199_v9, %v2619_v15 }
 0x303   : > { %1229 = vrot.lane.b32.xlu1 %v1224_v10, %s2325_s12  ;;  %s1866_s12 = sshll.u32 %s2405_s17, 7  ;;  %s2328_s17 = smov [#allocation10]  }
 0x304   : > { %v1205_v12 = vpop.permute.xlu1 %1204  ;;  %v585_v16 = vpop.permute.xlu0 %584 }
 0x305   : > { %v1207_v13 = vadd.f32 %v1205_v12, %v1201_v11  ;;  %p2922_p10 = scmp.ne.s32.totalorder %s2919_s25, 0 }
 0x307   : > { %1226 = vrot.lane.b32.xlu0 %v1207_v13, %s2326_s0  ;;  %s482_s0 = scalar_lea.vmem [#allocation10], %s2564_s11  ;;  %s2228_s11 = sshll.u32 %s2328_s17, 4  ;;  %s2229_s11 = int_to_ptr.vmem [resolvable:$false] %s2228_s11 }
 0x308   : > { %v589_v14 = vpop.permute.xlu1 %588  ;;  %s1693_s29 = sshll.u32 %s482_s0, 4  ;;  %s1694_s29 = int_to_ptr.vmem [resolvable:$true] %s1693_s29 }
 0x309   : > { %v592_v17 = vsel %vm591_vm2, %v585_v16, %v589_v14  ;;  %p2231_p9 = scmp.lt.s32.totalorder %s1694_s29, %s2229_s11 }
 0x30a   : > { %v594_v19 = vmul.f32 %v592_v17, %v2656_v20 }
 0x30c   : > { %v595_v23 = vadd.f32 %v594_v19, %v593_v21 }
 0x357   : > { %v616_v22 = vpop.permute.xlu0 %615 }
 0x358   : > { %1921 = vmatpush3.xpose.msk.msra.mxu1 %vm617_vm3, %v616_v22 }
 0x359   : > { %1925 = vmatprep.subr.mxu1 %v2302_v4 }
 0x35b   : > { %1923 = vmatmul.mubr.msk.f32.vlgmr.msra.gmra.mxu1 %vm617_vm3, %v595_v23 }
 0x35c   : > { %1927 = vmatprep.mubr.msk.f32.mxu1 %vm2303_vm1, %v2302_v4 }
 0x369   : > { %v822_v24 = vpop.permute.xlu1 %821 }
 0x36a   : > { %1931 = vmatpush3.xpose.msk.msra.mxu0 %vm617_vm3, %v822_v24 }
 0x36b   : > { %1940 = vmatprep.subr.mxu0 %v2302_v4 }
 0x36d   : > { %v819_v20 = vpop.permute.xlu0 %818 }
 0x36e   : > { %1933 = vmatmul.mubr.msk.f32.vlgmr.msra.gmra.mxu0 %vm617_vm3, %v819_v20 }
 0x36f   : > { %1942 = vmatprep.mubr.msk.f32.mxu0 %vm2303_vm1, %v2302_v4 }
 0x371   : > { %v1026_v18 = vpop.permute.xlu1 %1025  ;;  %v1023_v25 = vpop.permute.xlu0 %1022 }
 0x372   : > { %1941 = vmatpush3.xpose.msk.msra.mxu0 %vm617_vm3, %v1026_v18 }
 0x373   : > { %1950 = vmatprep.subr.mxu0 %v2302_v4 }
 0x375   : > { %v1230_v26 = vpop.permute.xlu1 %1229  ;;  %1943 = vmatmul.mubr.msk.f32.vlgmr.msra.gmra.mxu0 %vm617_vm3, %v1023_v25 }
 0x376   : > { %1951 = vmatpush3.xpose.msk.msra.mxu0 %vm617_vm3, %v1230_v26  ;;  %1952 = vmatprep.mubr.msk.f32.mxu0 %vm2303_vm1, %v2302_v4 }
 0x377   : > { %1960 = vmatprep.subr.mxu0 %v2302_v4 }
 0x379   : > { %v1227_v27 = vpop.permute.xlu0 %1226 }
 0x37a   : > { %1953 = vmatmul.mubr.msk.f32.vlgmr.msra.gmra.mxu0 %vm617_vm3, %v1227_v27 }
 0x37b   : > { %1968 = vmatprep.mubr.msk.f32.mxu0 %vm2303_vm1, %v2302_v4 }
 0x41b   : > { %v689_v29 = vpop.f32.mrf.mxu1 }
 0x41c   : > { %v693_v30 = vmul.f32 0.35355338, %v689_v29  ;;  %v1415_v29 = vld [vmem:[%s2880_s7 + $0x18] sm:$0xff] }
 0x41d   : > { %v1924_v31 = vpop.f32.mrf.mxu1  ;;  %1961 = vmatpush3.msra.mxu0 %v1415_v29 }
 0x41e   : > { %v694_v32 = vadd.f32 %v693_v30, %v486_v28  ;;  %1962 = vmatprep.subr.mxu0 %v2302_v4 }
 0x420   : > { %v695_v33 = vmax.f32 %v694_v32, -3.4028235e+38  ;;  %v1414_v32 = vld [vmem:[%s2880_s7 + $0x10] sm:$0xff] }
 0x421   : > { %1963 = vmatpush3.msra.mxu0 %v1414_v32 }
 0x422   : > { %v696_v34 = vsel %vm617_vm3, %v695_v33, -inf  ;;  %1964 = vmatprep.subr.mxu0 %v2302_v4 }
 0x423   : > { %697 = vmax.xlane.f32.xlu1 %v696_v34  ;;  %v1412_v34 = vld [vmem:[%s2880_s7] sm:$0xff] }
 0x42e   : > { %v893_v35 = vpop.f32.mrf.mxu0 }
 0x42f   : > { %v897_v36 = vmul.f32 0.35355338, %v893_v35 }
 0x430   : > { %v1934_v37 = vpop.f32.mrf.mxu0 }
 0x431   : > { %v898_v38 = vadd.f32 %v897_v36, %v486_v28 }
 0x433   : > { %v899_v39 = vmax.f32 %v898_v38, -3.4028235e+38 }
 0x435   : > { %v1097_v40 = vpop.f32.mrf.mxu0  ;;  %v900_v41 = vsel %vm617_vm3, %v899_v39, -inf }
 0x436   : > { %v1101_v42 = vmul.f32 0.35355338, %v1097_v40  ;;  %901 = vmax.xlane.f32.xlu0 %v900_v41 }
 0x437   : > { %v1944_v43 = vpop.f32.mrf.mxu0 }
 0x438   : > { %v1102_v44 = vadd.f32 %v1101_v42, %v486_v28 }
 0x43a   : > { %v1301_v45 = vpop.f32.mrf.mxu0  ;;  %v1103_v46 = vmax.f32 %v1102_v44, -3.4028235e+38 }
 0x43b   : > { %v1305_v47 = vmul.f32 0.35355338, %v1301_v45 }
 0x43c   : > { %v1954_v48 = vpop.f32.mrf.mxu0  ;;  %v1104_v49 = vsel %vm617_vm3, %v1103_v46, -inf }
 0x43d   : > { %v1306_v50 = vadd.f32 %v1305_v47, %v486_v28  ;;  %1105 = vmax.xlane.f32.xlu0 %v1104_v49 }
 0x43f   : > { %v1307_v51 = vmax.f32 %v1306_v50, -3.4028235e+38  ;;  %v1509_v50 = vld [vmem:[%s2881_s8 + $0x18] sm:$0xff] }
 0x441   : > { %v1308_v52 = vsel %vm617_vm3, %v1307_v51, -inf }
 0x442   : > { %1309 = vmax.xlane.f32.xlu1 %v1308_v52  ;;  %v1506_v52 = vld [vmem:[%s2881_s8] sm:$0xff] }
 0x453   : > { %911 = vrot.lane.b32.xlu1 %v2619_v15, %s2317_s22  ;;  %s2224_s22 = scalar_lea.vmem %s1694_s29, 128 }
 0x454   : > { %p2225_p13 = scmp.ne.s32.totalorder %s1694_s29, %s2224_s22 }
 0x456   : > { %p2226_p1 = pnand %p2225_p13, %p2922_p10 }
 0x458   : > { %p2227_p3 = pneg %p2226_p1 }
 0x4ac   : > { %v698_v53 = vpop.xlane.xlu1 %697 }
 0x4ad   : > { %v699_v54 = vsub.f32 %v695_v33, %v698_v53  ;;  %v1413_v33 = vld [vmem:[%s2880_s7 + $0x8] sm:$0xff] }
 0x4ae   : > { %1965 = vmatpush3.msra.mxu0 %v1413_v33 }
 0x4af   : > { %v700_v55 = vmul.f32 1.442695, %v699_v54  ;;  %1966 = vmatprep.subr.mxu0 %v2302_v4 }
 0x4b0   : > { %1967 = vmatpush3.msra.mxu0 %v1412_v34 }
 0x4b1   : > { %2090 = vpow2.f32 %v700_v55  ;;  %1982 = vmatprep.subr.mxu0 %v2302_v4 }
 0x4be   : > { %v2091_v56 = vpop.eup %2090 }
 0x4bf   : > { %v902_v57 = vpop.xlane.xlu0 %901  ;;  %v702_v58 = vsel %vm617_vm3, %v2091_v56, 0.0 }
 0x4c0   : > { %v903_v59 = vsub.f32 %v899_v39, %v902_v57  ;;  %703 = vadd.xlane.f32.xlu0 %v702_v58  ;;  %v1861_v57 = vld [vmem:[%s2878_s5] ss:$0 sm:$0xff] }
 0x4c2   : > { %v904_v60 = vmul.f32 1.442695, %v903_v59 }
 0x4c4   : > { %2092 = vpow2.f32 %v904_v60  ;;  %v1602_v60 = vld [vmem:[%s2918_s9 + $0x38] sm:$0xff] }
 0x4c6   : > { %v1106_v3 = vpop.xlane.xlu0 %1105 }
 0x4c7   : > { %v1107_v5 = vsub.f32 %v1103_v46, %v1106_v3  ;;  %v1596_v3 = vld [vmem:[%s2918_s9 + $0x8] sm:$0xff] }
 0x4c9   : > { %v1108_v8 = vmul.f32 1.442695, %v1107_v5  ;;  %v1595_v5 = vld [vmem:[%s2918_s9] sm:$0xff] }
 0x4cb   : > { %v1310_v61 = vpop.xlane.xlu1 %1309 }
 0x4cc   : > { %v1311_v62 = vsub.f32 %v1307_v51, %v1310_v61  ;;  %v1508_v51 = vld [vmem:[%s2881_s8 + $0x10] sm:$0xff] }
 0x4cd   : > { %v1601_v61 = vld [vmem:[%s2918_s9 + $0x30] sm:$0xff] }
 0x4ce   : > { %v1312_v63 = vmul.f32 1.442695, %v1311_v62  ;;  %v1600_v62 = vld [vmem:[%s2918_s9 + $0x28] sm:$0xff] }
 0x4cf   : > { %v912_v14 = vpop.permute.xlu1 %911 }
 0x4d0   : > { %2094 = vpow2.f32 %v1312_v63  ;;  %v1599_v63 = vld [vmem:[%s2918_s9 + $0x20] sm:$0xff] }
 0x4d1   : > { %v2093_v1 = vpop.eup %2092  ;;  %2096 = vpow2.f32 %v1108_v8 }
 0x4d2   : > { %v906_v2 = vsel %vm617_vm3, %v2093_v1, 0.0 }
 0x4d3   : > { %907 = vadd.xlane.f32.xlu1 %v906_v2  ;;  %v1597_v2 = vld [vmem:[%s2918_s9 + $0x10] sm:$0xff] }
 0x4d6   : > { %707 = vrot.lane.b32.xlu0 %v2619_v15, %s2327_s1 }
 0x4dd   : > { %v2095_v6 = vpop.eup %2094 }
 0x4de   : > { %v1314_v7 = vsel %vm617_vm3, %v2095_v6, 0.0  ;;  %v2097_v9 = vpop.eup %2096 }
 0x4df   : > { %1315 = vadd.xlane.f32.xlu1 %v1314_v7  ;;  %v1110_v10 = vsel %vm617_vm3, %v2097_v9, 0.0 }
 0x4f0   : > { %1115 = vrot.lane.b32.xlu1 %v2619_v15, %s2316_s23  ;;  %s2921_s23 = smov %s2920_s16 }
 0x4f5   : > { %1111 = vadd.xlane.f32.xlu0 %v1110_v10 }
 0x50b   : > { %1319 = vrot.lane.b32.xlu0 %v2619_v15, %s2312_s13  ;;  %s2835_s13 = scalar_lea.hbm %s2920_s16, %s1866_s12 }
 0x549   : > { %v704_v11 = vpop.xlane.xlu0 %703 }
 0x54a   : > { %2098 = vrcp.f32 %v704_v11 }
 0x54d   : > { %v708_v12 = vpop.permute.xlu0 %707 }
 0x54e   : > { %1926 = vmatpush3.msra.mxu1 %v708_v12 }
 0x54f   : > { %1935 = vmatprep.subr.mxu1 %v2302_v4 }
 0x557   : > { %v2099_v13 = vpop.eup %2098 }
 0x558   : > { %v706_v16 = vmul.f32 %v2099_v13, %v2091_v56 }
 0x55a   : > { %1928 = vmatmul.mubr.msk.f32.vlgmr.msra.gmra.mxu1 %vm617_vm3, %v706_v16 }
 0x55b   : > { %1936 = vmatpush3.msra.mxu1 %v912_v14  ;;  %1937 = vmatprep.mubr.msk.f32.mxu1 %vm2303_vm1, %v2302_v4 }
 0x55c   : > { %v908_v17 = vpop.xlane.xlu1 %907  ;;  %1945 = vmatprep.subr.mxu1 %v2302_v4 }
 0x55d   : > { %2100 = vrcp.f32 %v908_v17 }
 0x568   : > { %v1316_v15 = vpop.xlane.xlu1 %1315 }
 0x56a   : > { %v2101_v19 = vpop.eup %2100 }
 0x56b   : > { %v910_v21 = vmul.f32 %v2101_v19, %v2093_v1  ;;  %v1598_v1 = vld [vmem:[%s2918_s9 + $0x18] sm:$0xff] }
 0x56c   : > { %v1116_v22 = vpop.permute.xlu1 %1115 }
 0x56d   : > { %1938 = vmatmul.mubr.msk.f32.vlgmr.msra.gmra.mxu1 %vm617_vm3, %v910_v21 }
 0x56e   : > { %1946 = vmatpush3.msra.mxu1 %v1116_v22  ;;  %1947 = vmatprep.mubr.msk.f32.mxu1 %vm2303_vm1, %v2302_v4 }
 0x56f   : > { %1955 = vmatprep.subr.mxu1 %v2302_v4 }
 0x57e   : > { %v1112_v23 = vpop.xlane.xlu0 %1111 }
 0x57f   : > { %2102 = vrcp.f32 %v1112_v23 }
 0x580   : > { %2104 = vrcp.f32 %v1316_v15 }
 0x582   : > { %v1320_v25 = vpop.permute.xlu0 %1319 }
 0x58c   : > { %v2103_v24 = vpop.eup %2102 }
 0x58d   : > { %v1114_v20 = vmul.f32 %v2103_v24, %v2097_v9  ;;  %v2105_v18 = vpop.eup %2104 }
 0x58e   : > { %v1318_v26 = vmul.f32 %v2105_v18, %v2095_v6 }
 0x58f   : > { %1948 = vmatmul.mubr.msk.f32.vlgmr.msra.gmra.mxu1 %vm617_vm3, %v1114_v20 }
 0x590   : > { %1956 = vmatpush3.msra.mxu1 %v1320_v25  ;;  %1957 = vmatprep.mubr.msk.f32.mxu1 %vm2303_vm1, %v2302_v4 }
 0x591   : > { %1971 = vmatprep.subr.mxu1 %v2302_v4 }
 0x593   : > { %1958 = vmatmul.mubr.msk.f32.vlgmr.msra.gmra.mxu1 %vm617_vm3, %v1318_v26 }
 0x594   : > { %1979 = vmatprep.mubr.msk.f32.mxu1 %vm2303_vm1, %v2302_v4  ;;  %1972 = vmatpush3.msra.mxu1 %v1509_v50 }
 0x595   : > { %1973 = vmatprep.subr.mxu1 %v2302_v4 }
 0x596   : > { %1974 = vmatpush3.msra.mxu1 %v1508_v51 }
 0x597   : > { %1975 = vmatprep.subr.mxu1 %v2302_v4 }
 0x61a   : > { %v779_v27 = vpop.f32.mrf.mxu1 }
 0x61c   : > { %v1929_v28 = vpop.f32.mrf.mxu1 }
 0x62d   : > { %v983_v30 = vpop.f32.mrf.mxu1 }
 0x62e   : > { %1396 = vrot.lane.b32.xlu1 %v983_v30, %s2313_s24  ;;  %s2230_s24 = scalar_lea.vmem %s2229_s11, 256 }
 0x62f   : > { %v1939_v31 = vpop.f32.mrf.mxu1  ;;  %p2232_p0 = scmp.lt.s32.totalorder %s2230_s24, %s2224_s22 }
 0x631   : > { %p2233_p11 = por %p2232_p0, %p2231_p9 }
 0x633   : > { %p2234_p12 = pnand %p2233_p11, %p2227_p3 }
 0x64f   : > { %v1187_v35 = vpop.f32.mrf.mxu1 }
 0x650   : > { %1400 = vrot.lane.b32.xlu0 %v1187_v35, %s2315_s18 }
 0x651   : > { %v1949_v36 = vpop.f32.mrf.mxu1 }
 0x653   : > { %v1391_v37 = vpop.f32.mrf.mxu1 }
 0x654   : > { %1404 = vrot.lane.b32.xlu1 %v1391_v37, %s2318_s20 }
 0x655   : > { %v1959_v38 = vpop.f32.mrf.mxu1 }
 0x6a0   : > { %v1397_v39 = vpop.permute.xlu1 %1396 }
 0x6a1   : > { %v1407_v41 = vsel %vm617_vm3, %v779_v27, %v1397_v39 }
 0x6c2   : > { %v1401_v40 = vpop.permute.xlu0 %1400 }
 0x6c3   : > { %v1409_v42 = vsel %vm1408_vm4, %v1407_v41, %v1401_v40 }
 0x6c6   : > { %v1405_v43 = vpop.permute.xlu1 %1404 }
 0x6c7   : > { %v1411_v44 = vsel %vm1410_vm5, %v1409_v42, %v1405_v43 }
 0x6c8   : > { %1969 = vmatmul.mubr.msk.f32.vlgmr.msra.gmra.mxu0 %vm488_vm0, %v1411_v44 }
 0x6c9   : > { %1998 = vmatprep.mubr.msk.f32.mxu0 %vm2303_vm1, %v2302_v4  ;;  %1983 = vmatpush3.msra.mxu0 %v1602_v60 }
 0x6ca   : > { %1984 = vmatprep.subr.mxu0 %v2302_v4 }
 0x6cb   : > { %1985 = vmatpush3.msra.mxu0 %v1601_v61 }
 0x6cc   : > { %1986 = vmatprep.subr.mxu0 %v2302_v4 }
 0x6cd   : > { %1987 = vmatpush3.msra.mxu0 %v1600_v62 }
 0x6ce   : > { %1988 = vmatprep.subr.mxu0 %v2302_v4 }
 0x6cf   : > { %1989 = vmatpush3.msra.mxu0 %v1599_v63 }
 0x6d0   : > { %1990 = vmatprep.subr.mxu0 %v2302_v4 }
 0x6d1   : > { %1991 = vmatpush3.msra.mxu0 %v1598_v1 }
 0x6d2   : > { %1992 = vmatprep.subr.mxu0 %v2302_v4 }
 0x6d3   : > { %1993 = vmatpush3.msra.mxu0 %v1597_v2 }
 0x6d4   : > { %1994 = vmatprep.subr.mxu0 %v2302_v4 }
 0x6d5   : > { %1995 = vmatpush3.msra.mxu0 %v1596_v3 }
 0x6d6   : > { %1996 = vmatprep.subr.mxu0 %v2302_v4 }
 0x6d7   : > { %1997 = vmatpush3.msra.mxu0 %v1595_v5 }
 0x788   : > { %v1485_v45 = vpop.f32.mrf.mxu0 }
 0x789   : > { %v2772_v46 = vadd.f32 %v1485_v45, %v2585_v0  ;;  %v1507_v0 = vld [vmem:[%s2881_s8 + $0x8] sm:$0xff] }
 0x78a   : > { %v1970_v47 = vpop.f32.mrf.mxu0  ;;  %1976 = vmatpush3.msra.mxu1 %v1507_v0 }
 0x78b   : > { %v1490_v48 = vmul.f32 %v2772_v46, %v2772_v46  ;;  %1977 = vmatprep.subr.mxu1 %v2302_v4 }
 0x78c   : > { %1978 = vmatpush3.msra.mxu1 %v1506_v52 }
 0x78d   : > { %v1491_v49 = vsel %vm488_vm0, %v1490_v48, 0.0 }
 0x78e   : > { %1492 = vadd.xlane.f32.xlu0 %v1491_v49 }
 0x817   : > { %v1493_v53 = vpop.xlane.xlu0 %1492 }
 0x818   : > { %v1494_v54 = vmul.f32 0.03125, %v1493_v53 }
 0x81a   : > { %v1495_v55 = vadd.f32 1e-06, %v1494_v54 }
 0x81c   : > { %2106 = vrsqrt.f32 %v1495_v55 }
 0x829   : > { %v2107_v56 = vpop.eup %2106 }
 0x82a   : > { %v1497_v58 = vmul.f32 %v2107_v56, %v2772_v46 }
 0x82c   : > { %v1505_v59 = vmul.f32 %v1861_v57, %v1497_v58 }
 0x82e   : > { %1980 = vmatmul.mubr.msk.f32.vlgmr.msra.gmra.mxu1 %vm488_vm0, %v1505_v59 }
 0x8ee   : > { %v1579_v6 = vpop.f32.mrf.mxu1 }
 0x8ef   : > { %1591 = vrot.lane.b32.xlu1 %v1579_v6, %s2327_s1  ;;  %v1863_v8 = vmul.f32 -1.442695, %v1579_v6 }
 0x8f0   : > { %v1981_v7 = vpop.f32.mrf.mxu1 }
 0x8f1   : > { %2108 = vpow2.f32 %v1863_v8 }
 0x8fe   : > { %v2109_v9 = vpop.eup %2108 }
 0x8ff   : > { %v1586_v10 = vadd.f32 1.0, %v2109_v9 }
 0x901   : > { %2110 = vrcp.f32 %v1586_v10 }
 0x90e   : > { %v2111_v11 = vpop.eup %2110 }
 0x90f   : > { %v1589_v12 = vmul.f32 %v2111_v11, %v1579_v6 }
 0x961   : > { %v1592_v4 = vpop.permute.xlu1 %1591 }
 0x962   : > { %v1594_v13 = vmul.f32 %v1592_v4, %v1589_v12 }
 0x964   : > { %1999 = vmatmul.mubr.msk.f32.vlgmr.msra.gmra.mxu0 %vm1603_vm6, %v1594_v13 }
 0xa24   : > { %v1673_v14 = vpop.f32.mrf.mxu0 }
 0xa25   : > { %v1677_v16 = vadd.f32 %v1673_v14, %v2772_v46 }
 0xa26   : > { %v2000_v17 = vpop.f32.mrf.mxu0 }
 0xa27   : > { %1678 = vst.msk [vmem:[%s482_s0] sm:$0xff] %vm488_vm0, %v1677_v16 }
 0xa28   : > { %2237 = shalt.err (!%p2234_p12)
}
 0xa29   : > { %s2238_s18 = scalar_lea.hbm %s2835_s13, 128  ;;  %s2242_s21 = scalar_lea.hbm %s2921_s23, 256 }
 0xa2a   : > { %p2239_p4 = scmp.ne.s32.totalorder %s2835_s13, %s2238_s18  ;;  %p2243_p6 = scmp.lt.s32.totalorder %s2835_s13, %s2921_s23 }
 0xa2b   : > { %p2244_p8 = scmp.lt.s32.totalorder %s2242_s21, %s2238_s18 }
 0xa2c   : > { %p2240_p5 = pnand %p2239_p4, %p2922_p10 }
 0xa2d   : > { %p2245_p2 = por %p2244_p8, %p2243_p6 }
 0xa2e   : > { %p2241_p7 = pneg %p2240_p5 }
 0xa30   : > { %p2246_p13 = pnand %p2245_p2, %p2241_p7 }
 0xa32   : > { %2249 = shalt.err (!%p2246_p13)
}
 0xa33   : > { %2009 = dma.vmem_to_hbm [thread:$0]  (%p2922_p10), %s1694_s29, 128, %s2835_s13, %s1680_s15  }
 0xa34 PF: > { %s2923_s26 = sld [smem:[#allocation15_spill]] }
 0xa35   : > { %s2924_s28 = sld [smem:[#allocation21_spill]] }
 0xa36   : > { %s2925_s12 = sld [smem:[#allocation17_spill]] }
 0xa3a   : > { %s1705_s0 = sand.u32 1, %s2923_s26  }
 0xa3b   : > { %p2926_p1 = scmp.ne.s32.totalorder %s2924_s28, 0  ;;  %s1706_s1 = scalar_lea.sflag [#allocation4], %s1705_s0 }
 0xa3c   : > { %p2927_p3 = scmp.ge.s32.totalorder %s2925_s12, 2 }
 0xa3e   : > { %p2025_p9 = pnand %p2927_p3, %p2926_p1 }
 0xa40   : > { %p2026_p0 = pneg %p2025_p9 }
 0xa42   : > { %2279 = dma.done.wait (%p2026_p0), %s1706_s1, 128  }
 0xa43   : > { %2281 = vsyncadd (%p2026_p0), %s1706_s1, 4294967168  ;;  %s2928_s16 = sld [smem:[#allocation18_spill]]  ;;  %s2931_s13 = smov %s2288_s14 }
 0xa44   : > { %s2929_s10 = sld [smem:[#allocation16_spill]] }
 0xa45   : > { %s2930_s15 = sld [smem:[#allocation19_spill]] }
 0xa49   : > { %p29_p11 = scmp.ge.s32.totalorder %s2928_s16, 4  }
 0xa4a   : > { %s2932_s14 = smov %s2929_s10 }
 0xa4b   :  { %31 = sbr.rel (!%p29_p11) target bundleno = 14 (0xe), region = 142 }
 0xa50   :  { %1711 = vsyncpa [#allocation3], 1 }
 0xa51   :  { %1713 = vsyncpa [#allocation3 + $0x1], 1 }
 0xa52   :  { %1714 = vsyncpa [#allocation6], 1 }
 0xa53   :  { %1716 = vsyncpa [#allocation6 + $0x1], 1 }
 0xa54   :  { %1717 = vsyncpa [#allocation9], 1 }
 0xa55   :  { %1719 = vsyncpa [#allocation9 + $0x1], 1 }
 0xa56   :  { %1720 = vsyncpa [#allocation4], 1 }
 0xa57   :  { %1722 = vsyncpa [#allocation4 + $0x1], 1 }

</bundles_post_ra>
